<compile_context>
chip_gen: v6e
topology: v6e:2x2x1
jax: 0.10.0
libtpu: 0.0.40
codegen_flags: <defaults>
</compile_context>

<pallas_src>
import functools

import numpy as np
import jax
import jax.numpy as jnp
from jax import lax
from jax.experimental import pallas as pl
from jax.experimental.pallas import tpu as pltpu


# ----------------------------------------------------------------------------
# Noise schedule (identical to the standard ddpm_schedules used by the module).
# ----------------------------------------------------------------------------
def ddpm_schedules(beta1: float, beta2: float, T: int):
    beta_t = (beta2 - beta1) * jnp.arange(0, T + 1, dtype=jnp.float32) / T + beta1
    alpha_t = jnp.exp(jnp.cumsum(jnp.log(1.0 - beta_t)))  # cumprod of (1 - beta)
    return {"beta_t": beta_t, "alpha_t": alpha_t}


def _round_up(x: int, m: int) -> int:
    return (x + m - 1) // m * m


# ----------------------------------------------------------------------------
# Fused kernel body.
#
# Layout (built by the wrapper):
#   * x/eps canvases: (CP, B_pad*ZRS) f32 -- channels (padded to CP, x also
#     carries a "ones" time-channel) in sublanes; per sample, the (H, W) image
#     sits at spatial offset (2, 2) of an (H+4, W+2) zero-padded canvas that is
#     flattened row-major and lane-padded to ZRS (multiple of 128).
#   * A 3x3 tap (dy, dx) is then a static lane shift of dy*(W+2)+dx, so each
#     conv is one K-packed matmul over a (9*Cin, NL) tap matrix staged in VMEM.
#   * Validity masks zero the SAME-padding ring (conv1 output) and the
#     wrap/tail/padded-sample positions (MSE), so cross-sample bleed of the
#     shifted taps never reaches the loss.
# ----------------------------------------------------------------------------
def _fused_ddpm_kernel(x_ref, eps_ref, sc_ref, w1_ref, b1_ref, w2_ref, b2_ref,
                       m1_ref, m2_ref, out_ref, zt_ref, ht_ref, *,
                       offs, bb, zrs, nl, cp, hid, eps_off, tail):
    zero_tail = jnp.zeros((cp, tail), jnp.float32)

    # --- fused noise add: z = sqrt(a)*x + sqrt(1-a)*eps (+ time channel) -----
    # sc_ref column s: rows [0,CP)   = [sa]*C ++ [t/n_T] ++ 0
    #                  rows [CP,2CP) = [sb]*C ++ 0
    parts = []
    for s in range(bb):
        ra = sc_ref[0, 0:cp, s:s + 1]                       # (CP, 1)
        rb = sc_ref[0, cp:2 * cp, s:s + 1]                  # (CP, 1)
        lo = s * zrs                                        # 128-aligned lane offset
        parts.append(ra * x_ref[:, lo:lo + zrs] + rb * eps_ref[:, lo:lo + zrs])
    z = jnp.concatenate(parts, axis=1)                      # (CP, NL), lane-dense
    zext = jnp.concatenate([z, zero_tail], axis=1)          # finite overhang for taps

    # --- conv1: build K-packed tap matrix (9*CP, NL), one MXU matmul ---------
    for k, off in enumerate(offs):
        zt_ref[k * cp:(k + 1) * cp, :] = zext[:, off:off + nl]
    h = jnp.dot(w1_ref[...], zt_ref[...], preferred_element_type=jnp.float32)
    h = jnp.maximum(h + b1_ref[...], 0.0) * m1_ref[...]     # ReLU + SAME-pad ring

    # --- conv2: build K-packed tap matrix (9*hid, NL), one MXU matmul --------
    hext = jnp.concatenate([h, jnp.zeros((hid, tail), jnp.float32)], axis=1)
    for k, off in enumerate(offs):
        ht_ref[k * hid:(k + 1) * hid, :] = hext[:, off:off + nl]
    pred = jnp.dot(w2_ref[...], ht_ref[...], preferred_element_type=jnp.float32)
    pred = pred + b2_ref[...]                               # (CP, NL), lane-dense

    # --- fused MSE epilogue: channel-reduced per-lane partial sums -----------
    epsv = jnp.concatenate([eps_ref[...], zero_tail], axis=1)[:, eps_off:eps_off + nl]
    d = (pred - epsv) * m2_ref[...]
    out_ref[...] = jnp.sum(d * d, axis=0, keepdims=True)    # (1, NL)


def _build_fused_call(B, C, H, W, hidden, BB):
    assert hidden % 8 == 0, "hidden channel count must be a multiple of 8"
    CP = max(8, _round_up(C + 1, 8))        # padded channels (C data + time chan)
    WB = W + 2                              # canvas width
    HB = H + 4                              # canvas rows (2 top, 2 bottom border)
    CANV = HB * WB                          # real canvas positions per sample
    M2 = H * WB                             # conv2 output rows per sample
    EPS_OFF = 2 * WB + 2                    # image origin offset in the flat canvas
    OFFS = tuple(dy * WB + dx for dy in range(3) for dx in range(3))
    ZRS = _round_up(CANV, 128)              # per-sample lane stride (128-aligned)
    TAIL = _round_up(EPS_OFF, 128)          # finite overhang for the tap shifts

    nb = -(-B // BB)                        # grid steps
    B_pad = nb * BB
    NL = BB * ZRS                           # lanes per grid step

    # Static validity masks (lane-dense rows).
    i = np.arange(ZRS)
    y1, x1 = i // WB, i % WB
    p1 = ((y1 >= 1) & (y1 <= H) & (x1 >= 1) & (x1 <= W)).astype(np.float32)
    mask1 = jnp.asarray(np.tile(p1, BB)[None, :])                    # (1, NL)
    p2 = ((i < M2) & (x1 < W)).astype(np.float32)
    m2 = np.tile(p2, B_pad).reshape(B_pad, ZRS)
    m2[B:] = 0.0                                                     # padded samples
    mask2 = jnp.asarray(m2.reshape(1, B_pad * ZRS))                  # (1, B_pad*ZRS)

    kern = functools.partial(_fused_ddpm_kernel, offs=OFFS, bb=BB, zrs=ZRS,
                             nl=NL, cp=CP, hid=hidden, eps_off=EPS_OFF, tail=TAIL)

    flops = nb * 2 * NL * 9 * CP * hidden * 2
    bytes_accessed = 4 * (2 * CP * B_pad * ZRS                       # x/eps canvases
                          + nb * 2 * CP * BB                         # scale columns
                          + hidden * 9 * CP + hidden                 # w1, b1
                          + CP * 9 * hidden + CP                     # w2, b2
                          + NL + B_pad * ZRS                         # masks
                          + B_pad * ZRS)                             # partial-loss out

    call = pl.pallas_call(
        kern,
        out_shape=jax.ShapeDtypeStruct((1, B_pad * ZRS), jnp.float32),
        grid=(nb,),
        in_specs=[
            pl.BlockSpec((CP, NL), lambda g: (0, g)),             # x canvas (transposed)
            pl.BlockSpec((CP, NL), lambda g: (0, g)),             # eps canvas (transposed)
            pl.BlockSpec((1, 2 * CP, BB), lambda g: (g, 0, 0)),   # per-sample scale columns
            pl.BlockSpec((hidden, 9 * CP), lambda g: (0, 0)),     # w1 (K-packed, resident)
            pl.BlockSpec((hidden, 1), lambda g: (0, 0)),          # b1
            pl.BlockSpec((CP, 9 * hidden), lambda g: (0, 0)),     # w2 (K-packed, resident)
            pl.BlockSpec((CP, 1), lambda g: (0, 0)),              # b2
            pl.BlockSpec((1, NL), lambda g: (0, 0)),              # mask1 (lane-dense)
            pl.BlockSpec((1, NL), lambda g: (0, g)),              # mask2 (lane-dense)
        ],
        out_specs=pl.BlockSpec((1, NL), lambda g: (0, g)),
        scratch_shapes=[
            pltpu.VMEM((9 * CP, NL), jnp.float32),                # conv1 K-packed taps
            pltpu.VMEM((9 * hidden, NL), jnp.float32),            # conv2 K-packed taps
        ],
        compiler_params=pltpu.CompilerParams(
            dimension_semantics=("parallel",),    # batch blocks split across v7x cores
            vmem_limit_bytes=32 * 1024 * 1024,
        ),
        cost_estimate=pl.CostEstimate(flops=flops, transcendentals=0,
                                      bytes_accessed=bytes_accessed),
    )
    meta = dict(CP=CP, WB=WB, HB=HB, CANV=CANV, ZRS=ZRS, NL=NL, nb=nb, B_pad=B_pad)
    return call, mask1, mask2, meta


# ----------------------------------------------------------------------------
# Public entry: MSE(eps, gt(z_t, t/n_T)) with z_t = sqrt(a)x + sqrt(1-a)eps.
# Everything after the RNG runs inside one fused Pallas kernel.
# ----------------------------------------------------------------------------
@functools.partial(jax.jit, static_argnums=(2,))
def fused_ddpm_loss(params, alpha_t, n_T, x, eps, t):
    B, C, H, W = x.shape
    hidden = params["w1"].shape[0]
    BB = max(1, min(B, 8))                      # samples per grid step
    call, mask1, mask2, meta = _build_fused_call(B, C, H, W, hidden, BB)
    CP, WB, HB = meta["CP"], meta["WB"], meta["HB"]
    CANV, ZRS = meta["CANV"], meta["ZRS"]
    nb, B_pad = meta["nb"], meta["B_pad"]

    a = alpha_t[t]
    sa = jnp.sqrt(a)
    sb = jnp.sqrt(1.0 - a)
    tf = t.astype(jnp.float32) / jnp.float32(n_T)

    # --- transposed, zero-padded canvases: (CP, B_pad*ZRS) -------------------
    # TODO(synk): canvas embedding still happens wrapper-side (one extra XLA
    # pass over x/eps, ~3x HBM inflation at these tiny shapes).
    x32 = x.astype(jnp.float32)
    eps32 = eps.astype(jnp.float32)
    ones_ch = jnp.ones((B, 1, H, W), jnp.float32)            # time-channel indicator
    xc = jnp.concatenate([x32, ones_ch], axis=1)             # (B, C+1, H, W)
    xc = jnp.pad(xc, ((0, B_pad - B), (0, CP - (C + 1)), (0, 0), (0, 0)))
    ec = jnp.pad(eps32, ((0, B_pad - B), (0, CP - C), (0, 0), (0, 0)))

    def to_canvas_t(arr):                                    # (B_pad, CP, H, W)
        a_ = jnp.pad(arr, ((0, 0), (0, 0), (2, HB - H - 2), (2, WB - W - 2)))
        a_ = a_.reshape(B_pad, CP, CANV)
        a_ = jnp.pad(a_, ((0, 0), (0, 0), (0, ZRS - CANV)))
        return jnp.transpose(a_, (1, 0, 2)).reshape(CP, B_pad * ZRS)

    x_can = to_canvas_t(xc)
    eps_can = to_canvas_t(ec)

    # --- per-sample channel scale columns: (nb, 2*CP, BB) --------------------
    row_a = jnp.concatenate([jnp.tile(sa[:, None], (1, C)), tf[:, None],
                             jnp.zeros((B, CP - C - 1), jnp.float32)], axis=1)
    row_b = jnp.concatenate([jnp.tile(sb[:, None], (1, C)),
                             jnp.zeros((B, CP - C), jnp.float32)], axis=1)
    sc = jnp.concatenate([row_a, row_b], axis=1)             # (B, 2*CP)
    sc = jnp.pad(sc, ((0, B_pad - B), (0, 0)))
    sc = jnp.transpose(sc.reshape(nb, BB, 2 * CP), (0, 2, 1))

    # --- K-packed, transposed conv weights ------------------------------------
    w1 = jnp.pad(params["w1"].astype(jnp.float32),
                 ((0, 0), (0, CP - (C + 1)), (0, 0), (0, 0)))     # (hidden, CP, 3, 3)
    w1t = jnp.transpose(w1, (0, 2, 3, 1)).reshape(hidden, 9 * CP)
    w2 = jnp.pad(params["w2"].astype(jnp.float32),
                 ((0, CP - C), (0, 0), (0, 0), (0, 0)))            # (CP, hidden, 3, 3)
    w2t = jnp.transpose(w2, (0, 2, 3, 1)).reshape(CP, 9 * hidden)
    b1 = params["b1"].astype(jnp.float32).reshape(hidden, 1)
    b2 = jnp.pad(params["b2"].astype(jnp.float32), (0, CP - C)).reshape(CP, 1)

    partial = call(x_can, eps_can, sc, w1t, b1, w2t, b2, mask1, mask2)
    return jnp.sum(partial) / jnp.float32(B * C * H * W)


def ddpm_forward(params, alpha_t, n_T, x, key):
    """DDPM.forward: t ~ U{1,...,n_T-1} (matches torch.randint(1, n_T)),
    eps ~ N(0, I), return MSE(eps, gt(z_t, t/n_T))."""
    B = x.shape[0]
    k_t, k_eps = jax.random.split(key)
    t = jax.random.randint(k_t, (B,), 1, n_T)
    eps = jax.random.normal(k_eps, x.shape, dtype=jnp.float32)
    return fused_ddpm_loss(params, alpha_t, n_T, x, eps, t)


# TODO(synk): DDPM.sample() (the reverse-diffusion loop) is not implemented here;
# only the training forward pass is covered.


# ----------------------------------------------------------------------------
# Synthetic `gt` network parameters (two 3x3 convs, ReLU in between).
# ----------------------------------------------------------------------------
def init_gt_params(key, c_in, hidden):
    k1, k2 = jax.random.split(key)
    return {
        "w1": 0.1 * jax.random.normal(k1, (hidden, c_in + 1, 3, 3), jnp.float32),
        "b1": jnp.zeros((hidden,), jnp.float32),
        "w2": 0.1 * jax.random.normal(k2, (c_in, hidden, 3, 3), jnp.float32),
        "b2": jnp.zeros((c_in,), jnp.float32),
    }


# ----------------------------------------------------------------------------
# Pure-JAX reference (XLA conv) for a correctness cross-check.
# ----------------------------------------------------------------------------
def reference_loss(params, alpha_t, n_T, x, eps, t):
    B, C, H, W = x.shape
    a = alpha_t[t][:, None, None, None]
    z = jnp.sqrt(a) * x + jnp.sqrt(1.0 - a) * eps
    z_nhwc = jnp.transpose(z, (0, 2, 3, 1))
    tf = (t.astype(jnp.float32) / n_T)[:, None, None, None]
    t_ch = jnp.broadcast_to(tf, (B, H, W, 1))
    h = jnp.concatenate([z_nhwc, t_ch], axis=-1)

    def conv(xin, w, b):
        out = lax.conv_general_dilated(
            xin, jnp.transpose(w, (2, 3, 1, 0)), (1, 1), "SAME",
            dimension_numbers=("NHWC", "HWIO", "NHWC"),
            precision=lax.Precision.HIGHEST)
        return out + b

    h = jnp.maximum(conv(h, params["w1"], params["b1"]), 0.0)
    pred = conv(h, params["w2"], params["b2"])
    eps_nhwc = jnp.transpose(eps, (0, 2, 3, 1))
    return jnp.mean((pred - eps_nhwc) ** 2)


if __name__ == "__main__":
    B, C, H, W = 2, 4, 16, 16
    hidden = 32
    n_T = 100
    betas = (1e-4, 0.02)

    key = jax.random.PRNGKey(0)
    k_params, k_x, k_t, k_eps, k_fwd = jax.random.split(key, 5)

    params = init_gt_params(k_params, C, hidden)
    alpha_t = ddpm_schedules(betas[0], betas[1], n_T)["alpha_t"]
    x = jax.random.normal(k_x, (B, C, H, W), dtype=jnp.float32)

    # Deterministic t / eps so the fused kernel can be checked against pure JAX.
    t = jax.random.randint(k_t, (B,), 1, n_T)      # U{1,...,n_T-1}, as in the module
    eps = jax.random.normal(k_eps, x.shape, dtype=jnp.float32)

    loss = fused_ddpm_loss(params, alpha_t, n_T, x, eps, t)
    loss = jax.block_until_ready(loss)
    ref = reference_loss(params, alpha_t, n_T, x, eps, t)
    ref = jax.block_until_ready(ref)

    assert loss.shape == () and bool(jnp.isfinite(loss))
    assert jnp.allclose(loss, ref, rtol=5e-3, atol=1e-5), (float(loss), float(ref))

    # Also exercise the sampling wrapper (DDPM.forward signature parity).
    loss2 = jax.block_until_ready(ddpm_forward(params, alpha_t, n_T, x, k_fwd))
    assert bool(jnp.isfinite(loss2))

    print("KERNEL_OK")
</pallas_src>

<mosaic_0001>
module attributes {stable_mosaic.version = 11 : i64} {
  func.func @_fused_ddpm_kernel(%arg0: i32, %arg1: memref<8x768xf32, #tpu.memory_space<vmem>>, %arg2: memref<8x768xf32, #tpu.memory_space<vmem>>, %arg3: memref<1x16x2xf32, #tpu.memory_space<vmem>>, %arg4: memref<32x72xf32, #tpu.memory_space<vmem>>, %arg5: memref<32x1xf32, #tpu.memory_space<vmem>>, %arg6: memref<8x288xf32, #tpu.memory_space<vmem>>, %arg7: memref<8x1xf32, #tpu.memory_space<vmem>>, %arg8: memref<1x768xf32, #tpu.memory_space<vmem>>, %arg9: memref<1x768xf32, #tpu.memory_space<vmem>>, %arg10: memref<1x768xf32, #tpu.memory_space<vmem>>, %arg11: memref<72x768xf32, #tpu.memory_space<vmem>>, %arg12: memref<288x768xf32, #tpu.memory_space<vmem>>) attributes {dimension_semantics = [#tpu.dimension_semantics<parallel>], iteration_bounds = array<i64: 1>, scalar_prefetch = 0 : i64, scratch_operands = 2 : i64, tpu.core_type = #tpu.core_type<tc>, window_params = [{transform_indices = @transform_0, window_bounds = array<i64: 8, 768>}, {transform_indices = @transform_1, window_bounds = array<i64: 8, 768>}, {transform_indices = @transform_2, window_bounds = array<i64: 1, 16, 2>}, {pipeline_mode = #tpu.pipeline_mode<synchronous>, transform_indices = @transform_3, window_bounds = array<i64: 32, 72>}, {pipeline_mode = #tpu.pipeline_mode<synchronous>, transform_indices = @transform_4, window_bounds = array<i64: 32, 1>}, {pipeline_mode = #tpu.pipeline_mode<synchronous>, transform_indices = @transform_5, window_bounds = array<i64: 8, 288>}, {pipeline_mode = #tpu.pipeline_mode<synchronous>, transform_indices = @transform_6, window_bounds = array<i64: 8, 1>}, {pipeline_mode = #tpu.pipeline_mode<synchronous>, transform_indices = @transform_7, window_bounds = array<i64: 1, 768>}, {transform_indices = @transform_8, window_bounds = array<i64: 1, 768>}, {transform_indices = @transform_9, window_bounds = array<i64: 1, 768>}]} {
    %cst = arith.constant 0.000000e+00 : f32
    %0 = vector.broadcast %cst : f32 to vector<8x128xf32>
    %c0 = arith.constant 0 : index
    %c0_0 = arith.constant 0 : index
    %c0_1 = arith.constant 0 : index
    %1 = vector.load %arg3[%c0, %c0_0, %c0_1] : memref<1x16x2xf32, #tpu.memory_space<vmem>>, vector<1x8x1xf32>
    %2 = vector.shape_cast %1 : vector<1x8x1xf32> to vector<8x1xf32>
    %c0_2 = arith.constant 0 : index
    %c8 = arith.constant 8 : index
    %c0_3 = arith.constant 0 : index
    %3 = vector.load %arg3[%c0_2, %c8, %c0_3] : memref<1x16x2xf32, #tpu.memory_space<vmem>>, vector<1x8x1xf32>
    %4 = vector.shape_cast %3 : vector<1x8x1xf32> to vector<8x1xf32>
    %c0_4 = arith.constant 0 : index
    %c0_5 = arith.constant 0 : index
    %5 = vector.load %arg1[%c0_4, %c0_5] : memref<8x768xf32, #tpu.memory_space<vmem>>, vector<8x384xf32>
    %6 = vector.broadcast %2 : vector<8x1xf32> to vector<8x384xf32>
    %7 = arith.mulf %6, %5 : vector<8x384xf32>
    %c0_6 = arith.constant 0 : index
    %c0_7 = arith.constant 0 : index
    %8 = vector.load %arg2[%c0_6, %c0_7] : memref<8x768xf32, #tpu.memory_space<vmem>>, vector<8x384xf32>
    %9 = vector.broadcast %4 : vector<8x1xf32> to vector<8x384xf32>
    %10 = arith.mulf %9, %8 : vector<8x384xf32>
    %11 = arith.addf %7, %10 : vector<8x384xf32>
    %c0_8 = arith.constant 0 : index
    %c0_9 = arith.constant 0 : index
    %c1 = arith.constant 1 : index
    %12 = vector.load %arg3[%c0_8, %c0_9, %c1] : memref<1x16x2xf32, #tpu.memory_space<vmem>>, vector<1x8x1xf32>
    %13 = vector.shape_cast %12 : vector<1x8x1xf32> to vector<8x1xf32>
    %c0_10 = arith.constant 0 : index
    %c8_11 = arith.constant 8 : index
    %c1_12 = arith.constant 1 : index
    %14 = vector.load %arg3[%c0_10, %c8_11, %c1_12] : memref<1x16x2xf32, #tpu.memory_space<vmem>>, vector<1x8x1xf32>
    %15 = vector.shape_cast %14 : vector<1x8x1xf32> to vector<8x1xf32>
    %c0_13 = arith.constant 0 : index
    %c384 = arith.constant 384 : index
    %16 = vector.load %arg1[%c0_13, %c384] : memref<8x768xf32, #tpu.memory_space<vmem>>, vector<8x384xf32>
    %17 = vector.broadcast %13 : vector<8x1xf32> to vector<8x384xf32>
    %18 = arith.mulf %17, %16 : vector<8x384xf32>
    %c0_14 = arith.constant 0 : index
    %c384_15 = arith.constant 384 : index
    %19 = vector.load %arg2[%c0_14, %c384_15] : memref<8x768xf32, #tpu.memory_space<vmem>>, vector<8x384xf32>
    %20 = vector.broadcast %15 : vector<8x1xf32> to vector<8x384xf32>
    %21 = arith.mulf %20, %19 : vector<8x384xf32>
    %22 = arith.addf %18, %21 : vector<8x384xf32>
    %23 = tpu.concatenate %11, %22 in 1 : vector<8x384xf32>, vector<8x384xf32> -> vector<8x768xf32>
    %24 = tpu.concatenate %23, %0 in 1 : vector<8x768xf32>, vector<8x128xf32> -> vector<8x896xf32>
    %25 = vector.extract_strided_slice %24 {offsets = [0, 0], sizes = [8, 768], strides = [1, 1]} : vector<8x896xf32> to vector<8x768xf32>
    %c0_16 = arith.constant 0 : index
    %c0_17 = arith.constant 0 : index
    %26 = vector.load %arg11[%c0_16, %c0_17] : memref<72x768xf32, #tpu.memory_space<vmem>>, vector<8x768xf32>
    tpu.vector_store %arg11[%c0_16, %c0_17], %25 {strides = array<i32>} : memref<72x768xf32, #tpu.memory_space<vmem>>, vector<8x768xf32>,
    %27 = vector.extract_strided_slice %24 {offsets = [0, 1], sizes = [8, 768], strides = [1, 1]} : vector<8x896xf32> to vector<8x768xf32>
    %c8_18 = arith.constant 8 : index
    %c0_19 = arith.constant 0 : index
    %28 = vector.load %arg11[%c8_18, %c0_19] : memref<72x768xf32, #tpu.memory_space<vmem>>, vector<8x768xf32>
    tpu.vector_store %arg11[%c8_18, %c0_19], %27 {strides = array<i32>} : memref<72x768xf32, #tpu.memory_space<vmem>>, vector<8x768xf32>,
    %29 = vector.extract_strided_slice %24 {offsets = [0, 2], sizes = [8, 768], strides = [1, 1]} : vector<8x896xf32> to vector<8x768xf32>
    %c16 = arith.constant 16 : index
    %c0_20 = arith.constant 0 : index
    %30 = vector.load %arg11[%c16, %c0_20] : memref<72x768xf32, #tpu.memory_space<vmem>>, vector<8x768xf32>
    tpu.vector_store %arg11[%c16, %c0_20], %29 {strides = array<i32>} : memref<72x768xf32, #tpu.memory_space<vmem>>, vector<8x768xf32>,
    %31 = vector.extract_strided_slice %24 {offsets = [0, 18], sizes = [8, 768], strides = [1, 1]} : vector<8x896xf32> to vector<8x768xf32>
    %c24 = arith.constant 24 : index
    %c0_21 = arith.constant 0 : index
    %32 = vector.load %arg11[%c24, %c0_21] : memref<72x768xf32, #tpu.memory_space<vmem>>, vector<8x768xf32>
    tpu.vector_store %arg11[%c24, %c0_21], %31 {strides = array<i32>} : memref<72x768xf32, #tpu.memory_space<vmem>>, vector<8x768xf32>,
    %33 = vector.extract_strided_slice %24 {offsets = [0, 19], sizes = [8, 768], strides = [1, 1]} : vector<8x896xf32> to vector<8x768xf32>
    %c32 = arith.constant 32 : index
    %c0_22 = arith.constant 0 : index
    %34 = vector.load %arg11[%c32, %c0_22] : memref<72x768xf32, #tpu.memory_space<vmem>>, vector<8x768xf32>
    tpu.vector_store %arg11[%c32, %c0_22], %33 {strides = array<i32>} : memref<72x768xf32, #tpu.memory_space<vmem>>, vector<8x768xf32>,
    %35 = vector.extract_strided_slice %24 {offsets = [0, 20], sizes = [8, 768], strides = [1, 1]} : vector<8x896xf32> to vector<8x768xf32>
    %c40 = arith.constant 40 : index
    %c0_23 = arith.constant 0 : index
    %36 = vector.load %arg11[%c40, %c0_23] : memref<72x768xf32, #tpu.memory_space<vmem>>, vector<8x768xf32>
    tpu.vector_store %arg11[%c40, %c0_23], %35 {strides = array<i32>} : memref<72x768xf32, #tpu.memory_space<vmem>>, vector<8x768xf32>,
    %37 = vector.extract_strided_slice %24 {offsets = [0, 36], sizes = [8, 768], strides = [1, 1]} : vector<8x896xf32> to vector<8x768xf32>
    %c48 = arith.constant 48 : index
    %c0_24 = arith.constant 0 : index
    %38 = vector.load %arg11[%c48, %c0_24] : memref<72x768xf32, #tpu.memory_space<vmem>>, vector<8x768xf32>
    tpu.vector_store %arg11[%c48, %c0_24], %37 {strides = array<i32>} : memref<72x768xf32, #tpu.memory_space<vmem>>, vector<8x768xf32>,
    %39 = vector.extract_strided_slice %24 {offsets = [0, 37], sizes = [8, 768], strides = [1, 1]} : vector<8x896xf32> to vector<8x768xf32>
    %c56 = arith.constant 56 : index
    %c0_25 = arith.constant 0 : index
    %40 = vector.load %arg11[%c56, %c0_25] : memref<72x768xf32, #tpu.memory_space<vmem>>, vector<8x768xf32>
    tpu.vector_store %arg11[%c56, %c0_25], %39 {strides = array<i32>} : memref<72x768xf32, #tpu.memory_space<vmem>>, vector<8x768xf32>,
    %41 = vector.extract_strided_slice %24 {offsets = [0, 38], sizes = [8, 768], strides = [1, 1]} : vector<8x896xf32> to vector<8x768xf32>
    %c64 = arith.constant 64 : index
    %c0_26 = arith.constant 0 : index
    %42 = vector.load %arg11[%c64, %c0_26] : memref<72x768xf32, #tpu.memory_space<vmem>>, vector<8x768xf32>
    tpu.vector_store %arg11[%c64, %c0_26], %41 {strides = array<i32>} : memref<72x768xf32, #tpu.memory_space<vmem>>, vector<8x768xf32>,
    %c0_27 = arith.constant 0 : index
    %c0_28 = arith.constant 0 : index
    %43 = vector.load %arg4[%c0_27, %c0_28] : memref<32x72xf32, #tpu.memory_space<vmem>>, vector<32x72xf32>
    %c0_29 = arith.constant 0 : index
    %c0_30 = arith.constant 0 : index
    %44 = vector.load %arg11[%c0_29, %c0_30] : memref<72x768xf32, #tpu.memory_space<vmem>>, vector<72x768xf32>
    %cst_31 = arith.constant dense<0.000000e+00> : vector<32x768xf32>
    %45 = tpu.matmul %43, %44, %cst_31 {dimension_numbers = #tpu.dot_dimension_numbers<[1], [0], [0], [1], [0, 0, 1, 1], [], []>} : vector<32x72xf32>, vector<72x768xf32>, vector<32x768xf32> -> vector<32x768xf32>
    %c0_32 = arith.constant 0 : index
    %c0_33 = arith.constant 0 : index
    %46 = vector.load %arg5[%c0_32, %c0_33] : memref<32x1xf32, #tpu.memory_space<vmem>>, vector<32x1xf32>
    %47 = vector.broadcast %46 : vector<32x1xf32> to vector<32x768xf32>
    %48 = arith.addf %45, %47 : vector<32x768xf32>
    %cst_34 = arith.constant 0.000000e+00 : f32
    %49 = vector.broadcast %cst_34 : f32 to vector<32x768xf32>
    %50 = arith.maximumf %48, %49 : vector<32x768xf32>
    %c0_35 = arith.constant 0 : index
    %c0_36 = arith.constant 0 : index
    %51 = vector.load %arg8[%c0_35, %c0_36] : memref<1x768xf32, #tpu.memory_space<vmem>>, vector<1x768xf32>
    %52 = vector.broadcast %51 : vector<1x768xf32> to vector<32x768xf32>
    %53 = arith.mulf %50, %52 : vector<32x768xf32>
    %cst_37 = arith.constant 0.000000e+00 : f32
    %54 = vector.broadcast %cst_37 : f32 to vector<32x128xf32>
    %55 = tpu.concatenate %53, %54 in 1 : vector<32x768xf32>, vector<32x128xf32> -> vector<32x896xf32>
    %56 = vector.extract_strided_slice %55 {offsets = [0, 0], sizes = [32, 768], strides = [1, 1]} : vector<32x896xf32> to vector<32x768xf32>
    %c0_38 = arith.constant 0 : index
    %c0_39 = arith.constant 0 : index
    %57 = vector.load %arg12[%c0_38, %c0_39] : memref<288x768xf32, #tpu.memory_space<vmem>>, vector<32x768xf32>
    tpu.vector_store %arg12[%c0_38, %c0_39], %56 {strides = array<i32>} : memref<288x768xf32, #tpu.memory_space<vmem>>, vector<32x768xf32>,
    %58 = vector.extract_strided_slice %55 {offsets = [0, 1], sizes = [32, 768], strides = [1, 1]} : vector<32x896xf32> to vector<32x768xf32>
    %c32_40 = arith.constant 32 : index
    %c0_41 = arith.constant 0 : index
    %59 = vector.load %arg12[%c32_40, %c0_41] : memref<288x768xf32, #tpu.memory_space<vmem>>, vector<32x768xf32>
    tpu.vector_store %arg12[%c32_40, %c0_41], %58 {strides = array<i32>} : memref<288x768xf32, #tpu.memory_space<vmem>>, vector<32x768xf32>,
    %60 = vector.extract_strided_slice %55 {offsets = [0, 2], sizes = [32, 768], strides = [1, 1]} : vector<32x896xf32> to vector<32x768xf32>
    %c64_42 = arith.constant 64 : index
    %c0_43 = arith.constant 0 : index
    %61 = vector.load %arg12[%c64_42, %c0_43] : memref<288x768xf32, #tpu.memory_space<vmem>>, vector<32x768xf32>
    tpu.vector_store %arg12[%c64_42, %c0_43], %60 {strides = array<i32>} : memref<288x768xf32, #tpu.memory_space<vmem>>, vector<32x768xf32>,
    %62 = vector.extract_strided_slice %55 {offsets = [0, 18], sizes = [32, 768], strides = [1, 1]} : vector<32x896xf32> to vector<32x768xf32>
    %c96 = arith.constant 96 : index
    %c0_44 = arith.constant 0 : index
    %63 = vector.load %arg12[%c96, %c0_44] : memref<288x768xf32, #tpu.memory_space<vmem>>, vector<32x768xf32>
    tpu.vector_store %arg12[%c96, %c0_44], %62 {strides = array<i32>} : memref<288x768xf32, #tpu.memory_space<vmem>>, vector<32x768xf32>,
    %64 = vector.extract_strided_slice %55 {offsets = [0, 19], sizes = [32, 768], strides = [1, 1]} : vector<32x896xf32> to vector<32x768xf32>
    %c128 = arith.constant 128 : index
    %c0_45 = arith.constant 0 : index
    %65 = vector.load %arg12[%c128, %c0_45] : memref<288x768xf32, #tpu.memory_space<vmem>>, vector<32x768xf32>
    tpu.vector_store %arg12[%c128, %c0_45], %64 {strides = array<i32>} : memref<288x768xf32, #tpu.memory_space<vmem>>, vector<32x768xf32>,
    %66 = vector.extract_strided_slice %55 {offsets = [0, 20], sizes = [32, 768], strides = [1, 1]} : vector<32x896xf32> to vector<32x768xf32>
    %c160 = arith.constant 160 : index
    %c0_46 = arith.constant 0 : index
    %67 = vector.load %arg12[%c160, %c0_46] : memref<288x768xf32, #tpu.memory_space<vmem>>, vector<32x768xf32>
    tpu.vector_store %arg12[%c160, %c0_46], %66 {strides = array<i32>} : memref<288x768xf32, #tpu.memory_space<vmem>>, vector<32x768xf32>,
    %68 = vector.extract_strided_slice %55 {offsets = [0, 36], sizes = [32, 768], strides = [1, 1]} : vector<32x896xf32> to vector<32x768xf32>
    %c192 = arith.constant 192 : index
    %c0_47 = arith.constant 0 : index
    %69 = vector.load %arg12[%c192, %c0_47] : memref<288x768xf32, #tpu.memory_space<vmem>>, vector<32x768xf32>
    tpu.vector_store %arg12[%c192, %c0_47], %68 {strides = array<i32>} : memref<288x768xf32, #tpu.memory_space<vmem>>, vector<32x768xf32>,
    %70 = vector.extract_strided_slice %55 {offsets = [0, 37], sizes = [32, 768], strides = [1, 1]} : vector<32x896xf32> to vector<32x768xf32>
    %c224 = arith.constant 224 : index
    %c0_48 = arith.constant 0 : index
    %71 = vector.load %arg12[%c224, %c0_48] : memref<288x768xf32, #tpu.memory_space<vmem>>, vector<32x768xf32>
    tpu.vector_store %arg12[%c224, %c0_48], %70 {strides = array<i32>} : memref<288x768xf32, #tpu.memory_space<vmem>>, vector<32x768xf32>,
    %72 = vector.extract_strided_slice %55 {offsets = [0, 38], sizes = [32, 768], strides = [1, 1]} : vector<32x896xf32> to vector<32x768xf32>
    %c256 = arith.constant 256 : index
    %c0_49 = arith.constant 0 : index
    %73 = vector.load %arg12[%c256, %c0_49] : memref<288x768xf32, #tpu.memory_space<vmem>>, vector<32x768xf32>
    tpu.vector_store %arg12[%c256, %c0_49], %72 {strides = array<i32>} : memref<288x768xf32, #tpu.memory_space<vmem>>, vector<32x768xf32>,
    %c0_50 = arith.constant 0 : index
    %c0_51 = arith.constant 0 : index
    %74 = vector.load %arg6[%c0_50, %c0_51] : memref<8x288xf32, #tpu.memory_space<vmem>>, vector<8x288xf32>
    %c0_52 = arith.constant 0 : index
    %c0_53 = arith.constant 0 : index
    %75 = vector.load %arg12[%c0_52, %c0_53] : memref<288x768xf32, #tpu.memory_space<vmem>>, vector<288x768xf32>
    %cst_54 = arith.constant dense<0.000000e+00> : vector<8x768xf32>
    %76 = tpu.matmul %74, %75, %cst_54 {dimension_numbers = #tpu.dot_dimension_numbers<[1], [0], [0], [1], [0, 0, 1, 1], [], []>} : vector<8x288xf32>, vector<288x768xf32>, vector<8x768xf32> -> vector<8x768xf32>
    %c0_55 = arith.constant 0 : index
    %c0_56 = arith.constant 0 : index
    %77 = vector.load %arg7[%c0_55, %c0_56] : memref<8x1xf32, #tpu.memory_space<vmem>>, vector<8x1xf32>
    %78 = vector.broadcast %77 : vector<8x1xf32> to vector<8x768xf32>
    %79 = arith.addf %76, %78 : vector<8x768xf32>
    %c0_57 = arith.constant 0 : index
    %c0_58 = arith.constant 0 : index
    %80 = vector.load %arg2[%c0_57, %c0_58] : memref<8x768xf32, #tpu.memory_space<vmem>>, vector<8x768xf32>
    %81 = tpu.concatenate %80, %0 in 1 : vector<8x768xf32>, vector<8x128xf32> -> vector<8x896xf32>
    %82 = vector.extract_strided_slice %81 {offsets = [0, 38], sizes = [8, 768], strides = [1, 1]} : vector<8x896xf32> to vector<8x768xf32>
    %83 = arith.subf %79, %82 : vector<8x768xf32>
    %c0_59 = arith.constant 0 : index
    %c0_60 = arith.constant 0 : index
    %84 = vector.load %arg9[%c0_59, %c0_60] : memref<1x768xf32, #tpu.memory_space<vmem>>, vector<1x768xf32>
    %85 = vector.broadcast %84 : vector<1x768xf32> to vector<8x768xf32>
    %86 = arith.mulf %83, %85 : vector<8x768xf32>
    %87 = arith.mulf %86, %86 : vector<8x768xf32>
    %cst_61 = arith.constant dense<0.000000e+00> : vector<768xf32>
    %88 = vector.multi_reduction <add>, %87, %cst_61 [0] : vector<8x768xf32> to vector<768xf32>
    %89 = vector.shape_cast %88 : vector<768xf32> to vector<1x768xf32>
    %c0_62 = arith.constant 0 : index
    %c0_63 = arith.constant 0 : index
    %90 = vector.load %arg10[%c0_62, %c0_63] : memref<1x768xf32, #tpu.memory_space<vmem>>, vector<1x768xf32>
    tpu.vector_store %arg10[%c0_62, %c0_63], %89 {strides = array<i32>} : memref<1x768xf32, #tpu.memory_space<vmem>>, vector<1x768xf32>,
    return
  }
  func.func @transform_0(%arg0: i32) -> (i32, i32) {
    %c0_i32 = arith.constant 0 : i32
    %c0_i32_0 = arith.constant 0 : i32
    return %c0_i32, %arg0 : i32, i32
  }
  func.func @transform_1(%arg0: i32) -> (i32, i32) {
    %c0_i32 = arith.constant 0 : i32
    %c0_i32_0 = arith.constant 0 : i32
    return %c0_i32, %arg0 : i32, i32
  }
  func.func @transform_2(%arg0: i32) -> (i32, i32, i32) {
    %c0_i32 = arith.constant 0 : i32
    %c0_i32_0 = arith.constant 0 : i32
    %c0_i32_1 = arith.constant 0 : i32
    return %arg0, %c0_i32, %c0_i32_0 : i32, i32, i32
  }
  func.func @transform_3(%arg0: i32) -> (i32, i32) {
    %c0_i32 = arith.constant 0 : i32
    %c0_i32_0 = arith.constant 0 : i32
    %c0_i32_1 = arith.constant 0 : i32
    return %c0_i32, %c0_i32_0 : i32, i32
  }
  func.func @transform_4(%arg0: i32) -> (i32, i32) {
    %c0_i32 = arith.constant 0 : i32
    %c0_i32_0 = arith.constant 0 : i32
    %c0_i32_1 = arith.constant 0 : i32
    return %c0_i32, %c0_i32_0 : i32, i32
  }
  func.func @transform_5(%arg0: i32) -> (i32, i32) {
    %c0_i32 = arith.constant 0 : i32
    %c0_i32_0 = arith.constant 0 : i32
    %c0_i32_1 = arith.constant 0 : i32
    return %c0_i32, %c0_i32_0 : i32, i32
  }
  func.func @transform_6(%arg0: i32) -> (i32, i32) {
    %c0_i32 = arith.constant 0 : i32
    %c0_i32_0 = arith.constant 0 : i32
    %c0_i32_1 = arith.constant 0 : i32
    return %c0_i32, %c0_i32_0 : i32, i32
  }
  func.func @transform_7(%arg0: i32) -> (i32, i32) {
    %c0_i32 = arith.constant 0 : i32
    %c0_i32_0 = arith.constant 0 : i32
    %c0_i32_1 = arith.constant 0 : i32
    return %c0_i32, %c0_i32_0 : i32, i32
  }
  func.func @transform_8(%arg0: i32) -> (i32, i32) {
    %c0_i32 = arith.constant 0 : i32
    %c0_i32_0 = arith.constant 0 : i32
    return %c0_i32, %arg0 : i32, i32
  }
  func.func @transform_9(%arg0: i32) -> (i32, i32) {
    %c0_i32 = arith.constant 0 : i32
    %c0_i32_0 = arith.constant 0 : i32
    return %c0_i32, %arg0 : i32, i32
  }
}

</mosaic_0001>

<bundles_post_ra>
// kernel: fused_ddpm_loss.1
= control target key start
LH: loop header
LB: loop body
LE: loop exit
PB: predicated region body
PF: predicated region fallthrough
CT: control target
= control target key end

     0   :  { %v2672_v0 = vmov 0   ;;  %v2673_v2 = vmov 1   ;;  %v4659_v4 = vmov 0.0   ;;  %s2675_s13 = smov 90   ;;  %s2676_s14 = smov 91   ;;  %vm340_vm0 = vcmask 736256   ;;  %s4644_s2 = inlined_call_operand.vmem [shape: f32[1,16,2], index: 2, kind: input, shape index: {}]   ;;  %s4645_s0 = inlined_call_operand.vmem [shape: f32[8,768], index: 0, kind: input, shape index: {}]   ;;  %s4646_s1 = inlined_call_operand.vmem [shape: f32[8,768], index: 1, kind: input, shape index: {}]   ;;  %s4647_s4 = inlined_call_operand.vmem [shape: f32[32,1], index: 4, kind: input, shape index: {}]   ;;  %s4648_s3 = inlined_call_operand.vmem [shape: f32[32,72], index: 3, kind: input, shape index: {}]   ;;  %s4649_s7 = inlined_call_operand.vmem [shape: f32[1,768], index: 7, kind: input, shape index: {}]   ;;  %s4650_s5 = inlined_call_operand.vmem [shape: f32[8,288], index: 5, kind: input, shape index: {}]   ;;  %s4651_s6 = inlined_call_operand.vmem [shape: f32[8,1], index: 6, kind: input, shape index: {}]   ;;  %s4652_s8 = inlined_call_operand.vmem [shape: f32[1,768], index: 8, kind: input, shape index: {}]   ;;  %s4653_s9 = inlined_call_operand.vmem [shape: f32[1,768], index: 9, kind: output, shape index: {}]  }
   0x1   :  { %2669 = vset.pattern.permute.xlu0 %v2672_v0  ;;  %v32_v1 = vld [vmem:[%s4644_s2] sm:$0xff]  ;;  %2670 = vset.pattern.permute.xlu1 %v2673_v2  ;;  %v33_v3 = vld [vmem:[%s4644_s2 + $0x8] sm:$0xff]  ;;  %s2677_s15 = smov 92   ;;  %v36_v7 = vld [vmem:[%s4645_s0 + $0x10] sm:$0xff]  ;;  %s2678_s27 = smov 108   ;;  %vm307_vm1 = vcmask 744448  }
   0x2   :  { %39 = vperm.xlu0 %2669, %v32_v1   ;;  %63 = vperm.xlu1 %2670, %v32_v1   ;;  %v35_v6 = vld [vmem:[%s4645_s0 + $0x8] sm:$0xff]  ;;  %v47_v9 = vld [vmem:[%s4646_s1 + $0x10] sm:$0xff]  ;;  %v45_v11 = vld [vmem:[%s4646_s1] sm:$0xff]  ;;  %s2679_s28 = smov 109   ;;  %s2680_s29 = smov 110   ;;  %vm274_vm2 = vcmask 752640  }
   0x3   :  { %518 = vmatprep.mubr.f32.mxu0 %v4659_v4  ;;  %v46_v8 = vld [vmem:[%s4646_s1 + $0x8] sm:$0xff]  ;;  %v34_v16 = vld [vmem:[%s4645_s0] sm:$0xff]  ;;  %s2681_s30 = smov 126   ;;  %v59_v23 = vld [vmem:[%s4645_s0 + $0x18] sm:$0xff]  ;;  %s2682_s20 = smov 127   ;;  %vm241_vm3 = vcmask 883712  }
   0x4   :  { %v60_v24 = vld [vmem:[%s4645_s0 + $0x20] sm:$0xff]  ;;  %v69_v26 = vld [vmem:[%s4646_s1 + $0x18] sm:$0xff]  ;;  %v61_v34 = vld [vmem:[%s4645_s0 + $0x28] sm:$0xff]  ;;  %vm208_vm4 = vcmask 891904   ;;  %vm175_vm5 = vcmask 900096   ;;  %vm142_vm6 = vcmask 1031168  }
   0x5   :  { %v70_v27 = vld [vmem:[%s4646_s1 + $0x20] sm:$0xff]  ;;  %v71_v35 = vld [vmem:[%s4646_s1 + $0x28] sm:$0xff]  ;;  %v420_v36 = vld [vmem:[%s4647_s4 + $0x18] sm:$0xff]  ;;  %vm109_vm7 = vcmask 1039360   ;;  %vm441_vm8 = vcmask 588800   ;;  %vm2034_vm9 = vcmask 261120  }
   0x6   :  { %50 = vperm.xlu0 %2669, %v33_v3   ;;  %73 = vperm.xlu1 %2670, %v33_v3   ;;  %v418_v39 = vld [vmem:[%s4647_s4 + $0x8] sm:$0xff]  ;;  %v419_v42 = vld [vmem:[%s4647_s4 + $0x10] sm:$0xff]  ;;  %v417_v44 = vld [vmem:[%s4647_s4] sm:$0xff] }
   0xa   :  { %338 = vrot.lane.b32.xlu1 %v4659_v4, %s2675_s13 }
   0xb   :  { %2671 = vset.pattern.permute.xlu1 %v2672_v0 }
   0xe   :  { %305 = vrot.lane.b32.xlu1 %v4659_v4, %s2676_s14 }
  0x12   :  { %272 = vrot.lane.b32.xlu1 %v4659_v4, %s2677_s15 }
  0x7d   :  { %v40_v5 = vpop.permute.xlu0 %39  ;;  %v64_v22 = vpop.permute.xlu1 %63 }
  0x7e   :  { %v43_v12 = vmul.f32 %v40_v5, %v35_v6  ;;  %v44_v13 = vmul.f32 %v40_v5, %v36_v7  ;;  %v42_v20 = vmul.f32 %v40_v5, %v34_v16  ;;  %v66_v28 = vmul.f32 %v64_v22, %v59_v23 }
  0x7f   :  { %v67_v29 = vmul.f32 %v64_v22, %v60_v24  ;;  %v68_v37 = vmul.f32 %v64_v22, %v61_v34 }
  0x81   :  { %v51_v10 = vpop.permute.xlu0 %50  ;;  %v74_v25 = vpop.permute.xlu1 %73 }
  0x82   :  { %v54_v14 = vmul.f32 %v51_v10, %v46_v8  ;;  %v55_v15 = vmul.f32 %v51_v10, %v47_v9  ;;  %v53_v17 = vmul.f32 %v51_v10, %v45_v11  ;;  %v76_v30 = vmul.f32 %v74_v25, %v69_v26  ;;  %v2962_v26 = vld [vmem:[%s4648_s3] sm:$0xff] }
  0x83   :  { %v77_v31 = vmul.f32 %v74_v25, %v70_v27  ;;  %v78_v38 = vmul.f32 %v74_v25, %v71_v35 }
  0x84   :  { %v2765_v18 = vadd.f32 %v54_v14, %v43_v12  ;;  %v2767_v19 = vadd.f32 %v55_v15, %v44_v13  ;;  %v2773_v21 = vadd.f32 %v53_v17, %v42_v20  ;;  %v2827_v32 = vadd.f32 %v76_v30, %v66_v28 }
  0x85   :  { %v2829_v33 = vadd.f32 %v77_v31, %v67_v29  ;;  %v2881_v40 = vadd.f32 %v78_v38, %v68_v37  ;;  %v2895_v41 = vpop.permute.xlu1 %338 }
  0x86   :  { %330 = vrot.lane.b32.xlu1 %v2767_v19, %s2675_s13  ;;  %328 = vrot.lane.b32.xlu0 %v2765_v18, %s2675_s13  ;;  %4755 = vst [vmem:[#allocation4_spill] sm:$0xff] %v2895_v41 }
  0x89   :  { %v2904_v43 = vpop.permute.xlu1 %305 }
  0x8a   :  { %295 = vrot.lane.b32.xlu1 %v2765_v18, %s2676_s14  ;;  %326 = vrot.lane.b32.xlu0 %v2773_v21, %s2675_s13  ;;  %4756 = vst [vmem:[#allocation5_spill] sm:$0xff] %v2904_v43 }
  0x8d   :  { %v2913_v45 = vpop.permute.xlu1 %272 }
  0x8e   :  { %293 = vrot.lane.b32.xlu1 %v2773_v21, %s2676_s14  ;;  %297 = vrot.lane.b32.xlu0 %v2767_v19, %s2676_s14  ;;  %4757 = vst [vmem:[#allocation6_spill] sm:$0xff] %v2913_v45 }
  0x92   :  { %264 = vrot.lane.b32.xlu1 %v2767_v19, %s2677_s15  ;;  %262 = vrot.lane.b32.xlu0 %v2765_v18, %s2677_s15 }
  0x96   :  { %229 = vrot.lane.b32.xlu1 %v2765_v18, %s2678_s27  ;;  %260 = vrot.lane.b32.xlu0 %v2773_v21, %s2677_s15 }
  0x9a   :  { %227 = vrot.lane.b32.xlu1 %v2773_v21, %s2678_s27  ;;  %231 = vrot.lane.b32.xlu0 %v2767_v19, %s2678_s27 }
  0x9e   :  { %198 = vrot.lane.b32.xlu1 %v2767_v19, %s2679_s28  ;;  %196 = vrot.lane.b32.xlu0 %v2765_v18, %s2679_s28 }
  0xa2   :  { %163 = vrot.lane.b32.xlu1 %v2765_v18, %s2680_s29  ;;  %194 = vrot.lane.b32.xlu0 %v2773_v21, %s2679_s28 }
  0xa6   :  { %161 = vrot.lane.b32.xlu1 %v2773_v21, %s2680_s29  ;;  %165 = vrot.lane.b32.xlu0 %v2767_v19, %s2680_s29 }
  0xaa   :  { %132 = vrot.lane.b32.xlu1 %v2767_v19, %s2681_s30  ;;  %130 = vrot.lane.b32.xlu0 %v2765_v18, %s2681_s30 }
  0xae   :  { %97 = vrot.lane.b32.xlu1 %v2765_v18, %s2682_s20  ;;  %128 = vrot.lane.b32.xlu0 %v2773_v21, %s2681_s30 }
  0xb2   :  { %95 = vrot.lane.b32.xlu1 %v2773_v21, %s2682_s20  ;;  %99 = vrot.lane.b32.xlu0 %v2767_v19, %s2682_s20 }
  0xb6   :  { %334 = vrot.lane.b32.xlu1 %v2829_v33, %s2675_s13  ;;  %332 = vrot.lane.b32.xlu0 %v2827_v32, %s2675_s13 }
  0xba   :  { %301 = vrot.lane.b32.xlu1 %v2829_v33, %s2676_s14  ;;  %299 = vrot.lane.b32.xlu0 %v2827_v32, %s2676_s14 }
  0xbe   :  { %268 = vrot.lane.b32.xlu1 %v2829_v33, %s2677_s15  ;;  %266 = vrot.lane.b32.xlu0 %v2827_v32, %s2677_s15 }
  0xc2   :  { %235 = vrot.lane.b32.xlu1 %v2829_v33, %s2678_s27  ;;  %233 = vrot.lane.b32.xlu0 %v2827_v32, %s2678_s27 }
  0xc6   :  { %202 = vrot.lane.b32.xlu1 %v2829_v33, %s2679_s28  ;;  %200 = vrot.lane.b32.xlu0 %v2827_v32, %s2679_s28 }
  0xca   :  { %169 = vrot.lane.b32.xlu1 %v2829_v33, %s2680_s29  ;;  %167 = vrot.lane.b32.xlu0 %v2827_v32, %s2680_s29 }
  0xce   :  { %136 = vrot.lane.b32.xlu1 %v2829_v33, %s2681_s30  ;;  %134 = vrot.lane.b32.xlu0 %v2827_v32, %s2681_s30 }
  0xd2   :  { %103 = vrot.lane.b32.xlu1 %v2829_v33, %s2682_s20  ;;  %101 = vrot.lane.b32.xlu0 %v2827_v32, %s2682_s20 }
  0xd6   :  { %438 = vperm.xlu0 %2669, %v420_v36   ;;  %239 = vrot.lane.b32.xlu1 %v4659_v4, %s2678_s27  ;;  %v2992_v36 = vld [vmem:[%s4648_s3 + $0x10] sm:$0xff] }
  0xda   :  { %428 = vperm.xlu0 %2669, %v418_v39   ;;  %206 = vrot.lane.b32.xlu1 %v4659_v4, %s2679_s28 }
  0xde   :  { %336 = vrot.lane.b32.xlu0 %v2881_v40, %s2675_s13  ;;  %173 = vrot.lane.b32.xlu1 %v4659_v4, %s2680_s29 }
  0xe2   :  { %303 = vrot.lane.b32.xlu0 %v2881_v40, %s2676_s14  ;;  %140 = vrot.lane.b32.xlu1 %v4659_v4, %s2681_s30 }
  0xe6   :  { %270 = vrot.lane.b32.xlu0 %v2881_v40, %s2677_s15  ;;  %107 = vrot.lane.b32.xlu1 %v4659_v4, %s2682_s20 }
  0xea   :  { %237 = vrot.lane.b32.xlu0 %v2881_v40, %s2678_s27  ;;  %433 = vperm.xlu1 %2671, %v419_v42  }
  0xee   :  { %204 = vrot.lane.b32.xlu0 %v2881_v40, %s2679_s28  ;;  %423 = vperm.xlu1 %2671, %v417_v44   ;;  %v3006_v44 = vld [vmem:[%s4648_s3 + $0x18] sm:$0xff] }
  0xf2   :  { %171 = vrot.lane.b32.xlu0 %v2881_v40, %s2680_s29 }
  0xf6   :  { %138 = vrot.lane.b32.xlu0 %v2881_v40, %s2681_s30 }
  0xf8   :  { %v2917_v46 = vpop.permute.xlu1 %330  ;;  %v329_v47 = vpop.permute.xlu0 %328 }
  0xf9   :  { %v342_v48 = vsel %vm340_vm0, %v329_v47, %v2917_v46 }
  0xfa   :  { %468 = vmatprep.subr.mxu0 %v342_v48  ;;  %105 = vrot.lane.b32.xlu0 %v2881_v40, %s2682_s20 }
  0xfc   :  { %v296_v49 = vpop.permute.xlu1 %295  ;;  %v327_v50 = vpop.permute.xlu0 %326 }
  0xfd   :  { %v341_v51 = vsel %vm340_vm0, %v327_v50, %v329_v47 }
  0xfe   :  { %469 = vmatpush1.msra.mxu0 %v341_v51 }
 0x100   :  { %v294_v52 = vpop.permute.xlu1 %293  ;;  %v2924_v53 = vpop.permute.xlu0 %297 }
 0x101   :  { %v309_v54 = vsel %vm307_vm1, %v296_v49, %v2924_v53  ;;  %v308_v55 = vsel %vm307_vm1, %v294_v52, %v296_v49 }
 0x102   :  { %470 = vmatprep.subr.mxu0 %v309_v54 }
 0x103   :  { %471 = vmatpush1.msra.mxu0 %v308_v55 }
 0x104   :  { %v2929_v56 = vpop.permute.xlu1 %264  ;;  %v263_v57 = vpop.permute.xlu0 %262 }
 0x105   :  { %v276_v58 = vsel %vm274_vm2, %v263_v57, %v2929_v56 }
 0x106   :  { %472 = vmatprep.subr.mxu0 %v276_v58 }
 0x108   :  { %v230_v59 = vpop.permute.xlu1 %229  ;;  %v261_v60 = vpop.permute.xlu0 %260 }
 0x109   :  { %v275_v61 = vsel %vm274_vm2, %v261_v60, %v263_v57 }
 0x10a   :  { %473 = vmatpush1.msra.mxu0 %v275_v61 }
 0x10c   :  { %v228_v62 = vpop.permute.xlu1 %227  ;;  %v2934_v63 = vpop.permute.xlu0 %231 }
 0x10d   :  { %v243_v0 = vsel %vm241_vm3, %v230_v59, %v2934_v63  ;;  %v242_v1 = vsel %vm241_vm3, %v228_v62, %v230_v59 }
 0x10e   :  { %474 = vmatprep.subr.mxu0 %v243_v0 }
 0x10f   :  { %475 = vmatpush1.msra.mxu0 %v242_v1 }
 0x110   :  { %v2939_v2 = vpop.permute.xlu1 %198  ;;  %v197_v3 = vpop.permute.xlu0 %196 }
 0x111   :  { %v210_v5 = vsel %vm208_vm4, %v197_v3, %v2939_v2 }
 0x112   :  { %476 = vmatprep.subr.mxu0 %v210_v5 }
 0x114   :  { %v164_v6 = vpop.permute.xlu1 %163  ;;  %v195_v7 = vpop.permute.xlu0 %194 }
 0x115   :  { %v209_v8 = vsel %vm208_vm4, %v195_v7, %v197_v3 }
 0x116   :  { %477 = vmatpush1.msra.mxu0 %v209_v8 }
 0x118   :  { %v162_v9 = vpop.permute.xlu1 %161  ;;  %v2944_v10 = vpop.permute.xlu0 %165 }
 0x119   :  { %v177_v11 = vsel %vm175_vm5, %v164_v6, %v2944_v10  ;;  %v176_v12 = vsel %vm175_vm5, %v162_v9, %v164_v6 }
 0x11a   :  { %478 = vmatprep.subr.mxu0 %v177_v11 }
 0x11b   :  { %479 = vmatpush1.msra.mxu0 %v176_v12 }
 0x11c   :  { %v2949_v13 = vpop.permute.xlu1 %132  ;;  %v131_v14 = vpop.permute.xlu0 %130 }
 0x11d   :  { %v144_v15 = vsel %vm142_vm6, %v131_v14, %v2949_v13 }
 0x11e   :  { %480 = vmatprep.subr.mxu0 %v144_v15 }
 0x120   :  { %v98_v16 = vpop.permute.xlu1 %97  ;;  %v129_v17 = vpop.permute.xlu0 %128 }
 0x121   :  { %v143_v20 = vsel %vm142_vm6, %v129_v17, %v131_v14 }
 0x122   :  { %481 = vmatpush1.msra.mxu0 %v143_v20 }
 0x124   :  { %v96_v22 = vpop.permute.xlu1 %95  ;;  %v2954_v23 = vpop.permute.xlu0 %99 }
 0x125   :  { %v111_v24 = vsel %vm109_vm7, %v98_v16, %v2954_v23  ;;  %v110_v25 = vsel %vm109_vm7, %v96_v22, %v98_v16 }
 0x126   :  { %482 = vmatprep.subr.mxu0 %v111_v24 }
 0x127   :  { %483 = vmatpush1.msra.mxu0 %v110_v25 }
 0x128   :  { %v2964_v27 = vpop.permute.xlu1 %334  ;;  %484 = vmatprep.subr.mxu0 %v2765_v18  ;;  %v333_v28 = vpop.permute.xlu0 %332  ;;  %v2978_v18 = vld [vmem:[%s4648_s3 + $0x8] sm:$0xff] }
 0x129   :  { %485 = vmatpush1.msra.mxu0 %v2773_v21  ;;  %v344_v29 = vsel %vm340_vm0, %v333_v28, %v2964_v27  ;;  %v343_v30 = vsel %vm340_vm0, %v2917_v46, %v333_v28 }
 0x12a   :  { %2642 = vmatmul.mubr.msk.f32.vlgmr.msra.gmra.mxu0 %vm441_vm8, %v2962_v26  ;;  %557 = vmatprep.subr.mxu0 %v344_v29 }
 0x12b   :  { %558 = vmatpush1.msra.mxu0 %v343_v30  ;;  %524 = vmatprep.mubr.f32.mxu0 %v4659_v4 }
 0x12c   :  { %v2980_v31 = vpop.permute.xlu1 %301  ;;  %v300_v21 = vpop.permute.xlu0 %299 }
 0x12d   :  { %v311_v34 = vsel %vm307_vm1, %v300_v21, %v2980_v31  ;;  %v310_v35 = vsel %vm307_vm1, %v2924_v53, %v300_v21 }
 0x12e   :  { %2643 = vmatmul.mubr.msk.f32.gmra.mxu0 %vm441_vm8, %v2978_v18  ;;  %559 = vmatprep.subr.mxu0 %v311_v34 }
 0x12f   :  { %560 = vmatpush1.msra.mxu0 %v310_v35  ;;  %530 = vmatprep.mubr.f32.mxu0 %v4659_v4 }
 0x130   :  { %v2994_v37 = vpop.permute.xlu1 %268  ;;  %v267_v38 = vpop.permute.xlu0 %266 }
 0x131   :  { %v278_v39 = vsel %vm274_vm2, %v267_v38, %v2994_v37  ;;  %v277_v42 = vsel %vm274_vm2, %v2929_v56, %v267_v38 }
 0x132   :  { %2644 = vmatmul.mubr.msk.f32.gmra.mxu0 %vm441_vm8, %v2992_v36  ;;  %561 = vmatprep.subr.mxu0 %v278_v39 }
 0x133   :  { %562 = vmatpush1.msra.mxu0 %v277_v42  ;;  %536 = vmatprep.mubr.f32.mxu0 %v4659_v4 }
 0x134   :  { %v3008_v46 = vpop.permute.xlu1 %235  ;;  %v234_v47 = vpop.permute.xlu0 %233 }
 0x135   :  { %v245_v48 = vsel %vm241_vm3, %v234_v47, %v3008_v46  ;;  %v244_v49 = vsel %vm241_vm3, %v2934_v63, %v234_v47 }
 0x136   :  { %2645 = vmatmul.mubr.msk.f32.gmra.mxu0 %vm441_vm8, %v3006_v44  ;;  %563 = vmatprep.subr.mxu0 %v245_v48 }
 0x137   :  { %564 = vmatpush1.msra.mxu0 %v244_v49  ;;  %607 = vmatprep.mubr.f32.mxu0 %v4659_v4 }
 0x138   :  { %v203_v50 = vpop.permute.xlu1 %202  ;;  %v201_v51 = vpop.permute.xlu0 %200 }
 0x139   :  { %v212_v52 = vsel %vm208_vm4, %v201_v51, %v203_v50  ;;  %v211_v53 = vsel %vm208_vm4, %v2939_v2, %v201_v51 }
 0x13a   :  { %565 = vmatprep.subr.mxu0 %v212_v52 }
 0x13b   :  { %566 = vmatpush1.msra.mxu0 %v211_v53 }
 0x13c   :  { %v170_v54 = vpop.permute.xlu1 %169  ;;  %v168_v55 = vpop.permute.xlu0 %167 }
 0x13d   :  { %v179_v56 = vsel %vm175_vm5, %v168_v55, %v170_v54  ;;  %v178_v57 = vsel %vm175_vm5, %v2944_v10, %v168_v55 }
 0x13e   :  { %567 = vmatprep.subr.mxu0 %v179_v56 }
 0x13f   :  { %568 = vmatpush1.msra.mxu0 %v178_v57 }
 0x140   :  { %v137_v58 = vpop.permute.xlu1 %136  ;;  %v135_v59 = vpop.permute.xlu0 %134 }
 0x141   :  { %v146_v60 = vsel %vm142_vm6, %v135_v59, %v137_v58  ;;  %v145_v61 = vsel %vm142_vm6, %v2949_v13, %v135_v59 }
 0x142   :  { %569 = vmatprep.subr.mxu0 %v146_v60 }
 0x143   :  { %570 = vmatpush1.msra.mxu0 %v145_v61 }
 0x144   :  { %v104_v62 = vpop.permute.xlu1 %103  ;;  %v102_v63 = vpop.permute.xlu0 %101 }
 0x145   :  { %v113_v0 = vsel %vm109_vm7, %v102_v63, %v104_v62  ;;  %v112_v1 = vsel %vm109_vm7, %v2954_v23, %v102_v63 }
 0x146   :  { %571 = vmatprep.subr.mxu0 %v113_v0 }
 0x147   :  { %572 = vmatpush1.msra.mxu0 %v112_v1 }
 0x148   :  { %573 = vmatprep.subr.mxu0 %v2827_v32  ;;  %v3051_v6 = vpop.permute.xlu1 %239 }
 0x149   :  { %574 = vmatpush1.msra.mxu0 %v2767_v19  ;;  %4758 = vst [vmem:[#allocation7_spill] sm:$0xff] %v3051_v6 }
 0x14a   :  { %2646 = vmatmul.mubr.msk.f32.vlgmr.msra.gmra.mxu0 %vm441_vm8, %v2962_v26 }
 0x14b   :  { %613 = vmatprep.mubr.f32.mxu0 %v4659_v4 }
 0x14c   :  { %v3057_v11 = vpop.permute.xlu1 %206 }
 0x14d   :  { %4759 = vst [vmem:[#allocation8_spill] sm:$0xff] %v3057_v11 }
 0x14e   :  { %2647 = vmatmul.mubr.msk.f32.gmra.mxu0 %vm441_vm8, %v2978_v18 }
 0x14f   :  { %619 = vmatprep.mubr.f32.mxu0 %v4659_v4 }
 0x150   :  { %v3067_v17 = vpop.permute.xlu1 %173 }
 0x151   :  { %v3037_v2 = vpop.permute.xlu0 %438  ;;  %4760 = vst [vmem:[#allocation9_spill] sm:$0xff] %v3067_v17 }
 0x152   :  { %2648 = vmatmul.mubr.msk.f32.gmra.mxu0 %vm441_vm8, %v2992_v36 }
 0x153   :  { %625 = vmatprep.mubr.f32.mxu0 %v4659_v4 }
 0x154   :  { %v3072_v25 = vpop.permute.xlu1 %140 }
 0x155   :  { %v3042_v32 = vpop.permute.xlu0 %428  ;;  %4761 = vst [vmem:[#allocation10_spill] sm:$0xff] %v3072_v25 }
 0x156   :  { %2649 = vmatmul.mubr.msk.f32.gmra.mxu0 %vm441_vm8, %v3006_v44 }
 0x157   :  { %696 = vmatprep.mubr.f32.mxu0 %v4659_v4 }
 0x158   :  { %v3080_v21 = vpop.permute.xlu1 %107 }
 0x159   :  { %v337_v19 = vpop.permute.xlu0 %336  ;;  %4762 = vst [vmem:[#allocation11_spill] sm:$0xff] %v3080_v21 }
 0x15a   :  { %v346_v3 = vsel %vm340_vm0, %v337_v19, %v2895_v41  ;;  %v345_v5 = vsel %vm340_vm0, %v2964_v27, %v337_v19 }
 0x15b   :  { %646 = vmatprep.subr.mxu0 %v346_v3 }
 0x15c   :  { %647 = vmatpush1.msra.mxu0 %v345_v5 }
 0x15d   :  { %v304_v7 = vpop.permute.xlu0 %303 }
 0x15e   :  { %v313_v8 = vsel %vm307_vm1, %v304_v7, %v2904_v43  ;;  %v312_v9 = vsel %vm307_vm1, %v2980_v31, %v304_v7 }
 0x15f   :  { %648 = vmatprep.subr.mxu0 %v313_v8 }
 0x160   :  { %649 = vmatpush1.msra.mxu0 %v312_v9 }
 0x161   :  { %v271_v10 = vpop.permute.xlu0 %270 }
 0x162   :  { %v280_v12 = vsel %vm274_vm2, %v271_v10, %v2913_v45  ;;  %v279_v13 = vsel %vm274_vm2, %v2994_v37, %v271_v10 }
 0x163   :  { %650 = vmatprep.subr.mxu0 %v280_v12 }
 0x164   :  { %651 = vmatpush1.msra.mxu0 %v279_v13 }
 0x165   :  { %v238_v14 = vpop.permute.xlu0 %237 }
 0x166   :  { %v247_v15 = vsel %vm241_vm3, %v238_v14, %v3051_v6  ;;  %v246_v16 = vsel %vm241_vm3, %v3008_v46, %v238_v14 }
 0x167   :  { %652 = vmatprep.subr.mxu0 %v247_v15 }
 0x168   :  { %653 = vmatpush1.msra.mxu0 %v246_v16 }
 0x169   :  { %v205_v20 = vpop.permute.xlu0 %204 }
 0x16a   :  { %v214_v22 = vsel %vm208_vm4, %v205_v20, %v3057_v11  ;;  %v213_v23 = vsel %vm208_vm4, %v203_v50, %v205_v20 }
 0x16b   :  { %654 = vmatprep.subr.mxu0 %v214_v22 }
 0x16c   :  { %655 = vmatpush1.msra.mxu0 %v213_v23 }
 0x16d   :  { %v172_v24 = vpop.permute.xlu0 %171 }
 0x16e   :  { %v181_v27 = vsel %vm175_vm5, %v172_v24, %v3067_v17  ;;  %v180_v28 = vsel %vm175_vm5, %v170_v54, %v172_v24 }
 0x16f   :  { %656 = vmatprep.subr.mxu0 %v181_v27 }
 0x170   :  { %657 = vmatpush1.msra.mxu0 %v180_v28 }
 0x171   :  { %v139_v29 = vpop.permute.xlu0 %138 }
 0x172   :  { %v148_v30 = vsel %vm142_vm6, %v139_v29, %v3072_v25  ;;  %v147_v31 = vsel %vm142_vm6, %v137_v58, %v139_v29 }
 0x173   :  { %658 = vmatprep.subr.mxu0 %v148_v30 }
 0x174   :  { %659 = vmatpush1.msra.mxu0 %v147_v31 }
 0x175   :  { %v106_v34 = vpop.permute.xlu0 %105 }
 0x176   :  { %v115_v35 = vsel %vm109_vm7, %v106_v34, %v3080_v21  ;;  %v114_v37 = vsel %vm109_vm7, %v104_v62, %v106_v34 }
 0x177   :  { %660 = vmatprep.subr.mxu0 %v115_v35 }
 0x178   :  { %661 = vmatpush1.msra.mxu0 %v114_v37 }
 0x179   :  { %662 = vmatprep.subr.mxu0 %v2881_v40  ;;  %v3099_v40 = vpop.permute.xlu1 %433 }
 0x17a   :  { %663 = vmatpush1.msra.mxu0 %v2829_v33  ;;  %v4654_v33 = vlaneseq }
 0x17b   :  { %2650 = vmatmul.mubr.msk.f32.vlgmr.msra.gmra.mxu0 %vm441_vm8, %v2962_v26 }
 0x17c   :  { %702 = vmatprep.mubr.f32.mxu0 %v4659_v4  ;;  %v3102_v26 = vshrl.u32 %v4654_v33, 7 }
 0x17d   :  { %v3105_v38 = vpop.permute.xlu1 %423 }
 0x17e   :  { %4763 = vst [vmem:[#allocation12_spill] sm:$0xff] %v3102_v26  ;;  %v4658_v55 = vsub.s32 1, %v3102_v26  ;;  %v4656_v23 = vsub.s32 2, %v3102_v26 }
 0x17f   :  { %2651 = vmatmul.mubr.msk.f32.gmra.mxu0 %vm441_vm8, %v2978_v18  ;;  %v4657_v18 = vsub.s32 0, %v3102_v26 }
 0x180   :  { %708 = vmatprep.mubr.f32.mxu0 %v4659_v4 }
 0x183   :  { %2652 = vmatmul.mubr.msk.f32.gmra.mxu0 %vm441_vm8, %v2992_v36  ;;  %v3110_v36 = vld [vmem:[%s4649_s7] sm:$0x3f] }
 0x184   :  { %714 = vmatprep.mubr.f32.mxu0 %v4659_v4  ;;  %v754_v58 = vrot.slane %v3110_v36, %v4658_v55  ;;  %v3262_v27 = vrot.slane %v3110_v36, %v4656_v23 }
 0x187   :  { %2653 = vmatmul.mubr.msk.f32.gmra.mxu0 %vm441_vm8, %v3006_v44  ;;  %v750_v44 = vrot.slane %v3110_v36, %v4657_v18 }
 0x188   :  { %2173 = vmatprep.mubr.f32.mxu0 %v4659_v4 }
 0x1ea   :  { %v520_v39 = vpop.f32.mrf.mxu0 }
 0x1eb   :  { %v521_v42 = vadd.f32 %v520_v39, %v3105_v38 }
 0x1ec   :  { %v522_v46 = vpop.f32.mrf.mxu0 }
 0x1ed   :  { %v721_v47 = vmax.f32 %v521_v42, 0.0  ;;  %v523_v54 = vadd.f32 %v522_v46, %v3105_v38 }
 0x1ee   :  { %v526_v48 = vpop.f32.mrf.mxu0 }
 0x1ef   :  { %v3116_v49 = vmul.f32 %v750_v44, %v721_v47  ;;  %v527_v50 = vadd.f32 %v526_v48, %v3042_v32  ;;  %v722_v57 = vmax.f32 %v523_v54, 0.0 }
 0x1f0   :  { %v528_v53 = vpop.f32.mrf.mxu0 }
 0x1f1   :  { %v727_v51 = vmax.f32 %v527_v50, 0.0  ;;  %1089 = vrot.lane.b32.xlu1 %v3116_v49, %s2680_s29  ;;  %v529_v56 = vadd.f32 %v528_v53, %v3042_v32  ;;  %v3157_v60 = vmul.f32 %v754_v58, %v722_v57 }
 0x1f2   :  { %v532_v62 = vpop.f32.mrf.mxu0 }
 0x1f3   :  { %v3121_v52 = vmul.f32 %v750_v44, %v727_v51  ;;  %v728_v59 = vmax.f32 %v529_v56, 0.0  ;;  %v533_v0 = vadd.f32 %v532_v62, %v3099_v40 }
 0x1f4   :  { %v534_v63 = vpop.f32.mrf.mxu0 }
 0x1f5   :  { %969 = vrot.lane.b32.xlu1 %v3116_v49, %s2681_s30  ;;  %1101 = vrot.lane.b32.xlu0 %v3121_v52, %s2680_s29  ;;  %v3159_v61 = vmul.f32 %v754_v58, %v728_v59  ;;  %v733_v19 = vmax.f32 %v533_v0, 0.0  ;;  %v535_v14 = vadd.f32 %v534_v63, %v3099_v40  ;;  %v4655_v59 = vsub.s32 3, %v3102_v26 }
 0x1f6   :  { %v538_v1 = vpop.f32.mrf.mxu0 }
 0x1f7   :  { %v539_v3 = vadd.f32 %v538_v1, %v3037_v2  ;;  %v3187_v5 = vmul.f32 %v750_v44, %v733_v19  ;;  %v734_v15 = vmax.f32 %v535_v14, 0.0  ;;  %v3338_v1 = vrot.slane %v3110_v36, %v4655_v59 }
 0x1f8   :  { %v540_v9 = vpop.f32.mrf.mxu0 }
 0x1f9   :  { %849 = vrot.lane.b32.xlu1 %v3116_v49, %s2682_s20  ;;  %981 = vrot.lane.b32.xlu0 %v3121_v52, %s2681_s30  ;;  %v739_v7 = vmax.f32 %v539_v3, 0.0  ;;  %v541_v10 = vadd.f32 %v540_v9, %v3037_v2  ;;  %v3243_v16 = vmul.f32 %v754_v58, %v734_v15 }
 0x1fb   :  { %v3193_v8 = vmul.f32 %v750_v44, %v739_v7  ;;  %v740_v12 = vmax.f32 %v541_v10, 0.0 }
 0x1fd   :  { %1569 = vrot.lane.b32.xlu1 %v3116_v49, %s2676_s14  ;;  %861 = vrot.lane.b32.xlu0 %v3121_v52, %s2682_s20  ;;  %v3228_v13 = vmul.f32 %v754_v58, %v740_v12 }
 0x201   :  { %1449 = vrot.lane.b32.xlu1 %v3116_v49, %s2677_s15  ;;  %1581 = vrot.lane.b32.xlu0 %v3121_v52, %s2676_s14 }
 0x205   :  { %1329 = vrot.lane.b32.xlu1 %v3116_v49, %s2678_s27  ;;  %1461 = vrot.lane.b32.xlu0 %v3121_v52, %s2677_s15 }
 0x209   :  { %1209 = vrot.lane.b32.xlu1 %v3116_v49, %s2679_s28  ;;  %1341 = vrot.lane.b32.xlu0 %v3121_v52, %s2678_s27 }
 0x20a   :  { %v609_v20 = vpop.f32.mrf.mxu0 }
 0x20b   :  { %v610_v22 = vadd.f32 %v609_v20, %v3105_v38 }
 0x20c   :  { %v611_v37 = vpop.f32.mrf.mxu0 }
 0x20d   :  { %1689 = vrot.lane.b32.xlu1 %v3116_v49, %s2675_s13  ;;  %1701 = vrot.lane.b32.xlu0 %v3121_v52, %s2675_s13  ;;  %v723_v24 = vmax.f32 %v610_v22, 0.0  ;;  %v612_v58 = vadd.f32 %v611_v37, %v3105_v38 }
 0x20e   :  { %v615_v44 = vpop.f32.mrf.mxu0 }
 0x20f   :  { %v3271_v29 = vmul.f32 %v3262_v27, %v723_v24  ;;  %v616_v46 = vadd.f32 %v615_v44, %v3042_v32  ;;  %v724_v0 = vmax.f32 %v612_v58, 0.0 }
 0x210   :  { %v617_v12 = vpop.f32.mrf.mxu0 }
 0x211   :  { %1091 = vrot.lane.b32.xlu1 %v3157_v60, %s2680_s29  ;;  %1103 = vrot.lane.b32.xlu0 %v3159_v61, %s2680_s29  ;;  %4764 = vst [vmem:[#allocation13_spill] sm:$0xff] %v3271_v29  ;;  %v729_v50 = vmax.f32 %v616_v46, 0.0  ;;  %v3349_v7 = vmul.f32 %v3338_v1, %v724_v0  ;;  %v618_v14 = vadd.f32 %v617_v12, %v3042_v32 }
 0x212   :  { %v621_v22 = vpop.f32.mrf.mxu0 }
 0x213   :  { %v3315_v54 = vmul.f32 %v3262_v27, %v729_v50  ;;  %v730_v24 = vmax.f32 %v618_v14, 0.0  ;;  %v622_v6 = vadd.f32 %v621_v22, %v3099_v40 }
 0x214   :  { %v3372_v46 = vpop.f32.mrf.mxu0 }
 0x215   :  { %971 = vrot.lane.b32.xlu1 %v3157_v60, %s2681_s30  ;;  %983 = vrot.lane.b32.xlu0 %v3159_v61, %s2681_s30  ;;  %4770 = vst [vmem:[#allocation19_spill] sm:$0xff] %v3315_v54  ;;  %v3379_v50 = vmul.f32 %v3338_v1, %v730_v24 }
 0x216   :  { %v627_v12 = vpop.f32.mrf.mxu0 }
 0x217   :  { %v628_v14 = vadd.f32 %v627_v12, %v3037_v2 }
 0x218   :  { %v629_v25 = vpop.f32.mrf.mxu0 }
 0x219   :  { %851 = vrot.lane.b32.xlu1 %v3157_v60, %s2682_s20  ;;  %863 = vrot.lane.b32.xlu0 %v3159_v61, %s2682_s20  ;;  %v741_v24 = vmax.f32 %v628_v14, 0.0  ;;  %v630_v17 = vadd.f32 %v629_v25, %v3037_v2 }
 0x21b   :  { %v3407_v12 = vmul.f32 %v3262_v27, %v741_v24 }
 0x21d   :  { %1571 = vrot.lane.b32.xlu1 %v3157_v60, %s2676_s14  ;;  %1583 = vrot.lane.b32.xlu0 %v3159_v61, %s2676_s14  ;;  %4783 = vst [vmem:[#allocation32_spill] sm:$0xff] %v3407_v12 }
 0x221   :  { %1451 = vrot.lane.b32.xlu1 %v3157_v60, %s2677_s15  ;;  %1463 = vrot.lane.b32.xlu0 %v3159_v61, %s2677_s15 }
 0x225   :  { %1331 = vrot.lane.b32.xlu1 %v3157_v60, %s2678_s27  ;;  %1343 = vrot.lane.b32.xlu0 %v3159_v61, %s2678_s27 }
 0x229   :  { %1211 = vrot.lane.b32.xlu1 %v3157_v60, %s2679_s28  ;;  %1713 = vrot.lane.b32.xlu0 %v3187_v5, %s2675_s13 }
 0x22d   :  { %1691 = vrot.lane.b32.xlu1 %v3157_v60, %s2675_s13  ;;  %1125 = vrot.lane.b32.xlu0 %v3193_v8, %s2680_s29 }
 0x231   :  { %1221 = vrot.lane.b32.xlu1 %v3121_v52, %s2679_s28  ;;  %1005 = vrot.lane.b32.xlu0 %v3193_v8, %s2681_s30 }
 0x235   :  { %1223 = vrot.lane.b32.xlu1 %v3159_v61, %s2679_s28  ;;  %885 = vrot.lane.b32.xlu0 %v3193_v8, %s2682_s20 }
 0x239   :  { %1703 = vrot.lane.b32.xlu1 %v3159_v61, %s2675_s13  ;;  %1605 = vrot.lane.b32.xlu0 %v3193_v8, %s2676_s14 }
 0x23d   :  { %1113 = vrot.lane.b32.xlu1 %v3187_v5, %s2680_s29  ;;  %1485 = vrot.lane.b32.xlu0 %v3193_v8, %s2677_s15 }
 0x241   :  { %993 = vrot.lane.b32.xlu1 %v3187_v5, %s2681_s30  ;;  %1365 = vrot.lane.b32.xlu0 %v3193_v8, %s2678_s27 }
 0x245   :  { %873 = vrot.lane.b32.xlu1 %v3187_v5, %s2682_s20  ;;  %1245 = vrot.lane.b32.xlu0 %v3193_v8, %s2679_s28 }
 0x249   :  { %1593 = vrot.lane.b32.xlu1 %v3187_v5, %s2676_s14  ;;  %1725 = vrot.lane.b32.xlu0 %v3193_v8, %s2675_s13 }
 0x24d   :  { %1473 = vrot.lane.b32.xlu1 %v3187_v5, %s2677_s15  ;;  %1127 = vrot.lane.b32.xlu0 %v3228_v13, %s2680_s29 }
 0x251   :  { %1353 = vrot.lane.b32.xlu1 %v3187_v5, %s2678_s27  ;;  %1007 = vrot.lane.b32.xlu0 %v3228_v13, %s2681_s30 }
 0x255   :  { %1233 = vrot.lane.b32.xlu1 %v3187_v5, %s2679_s28  ;;  %887 = vrot.lane.b32.xlu0 %v3228_v13, %s2682_s20 }
 0x259   :  { %1115 = vrot.lane.b32.xlu1 %v3243_v16, %s2680_s29  ;;  %1607 = vrot.lane.b32.xlu0 %v3228_v13, %s2676_s14 }
 0x25d   :  { %995 = vrot.lane.b32.xlu1 %v3243_v16, %s2681_s30  ;;  %1487 = vrot.lane.b32.xlu0 %v3228_v13, %s2677_s15 }
 0x261   :  { %875 = vrot.lane.b32.xlu1 %v3243_v16, %s2682_s20  ;;  %1367 = vrot.lane.b32.xlu0 %v3228_v13, %s2678_s27 }
 0x263   :  { %v3264_v28 = vpop.permute.xlu1 %1089 }
 0x265   :  { %1595 = vrot.lane.b32.xlu1 %v3243_v16, %s2676_s14  ;;  %1247 = vrot.lane.b32.xlu0 %v3228_v13, %s2679_s28 }
 0x267   :  { %v3273_v30 = vpop.permute.xlu1 %969  ;;  %v3275_v31 = vpop.permute.xlu0 %1101 }
 0x269   :  { %1475 = vrot.lane.b32.xlu1 %v3243_v16, %s2677_s15  ;;  %1093 = vrot.lane.b32.xlu0 %v3271_v29, %s2680_s29 }
 0x26b   :  { %v3281_v34 = vpop.permute.xlu1 %849  ;;  %v3283_v35 = vpop.permute.xlu0 %981 }
 0x26d   :  { %1355 = vrot.lane.b32.xlu1 %v3243_v16, %s2678_s27  ;;  %973 = vrot.lane.b32.xlu0 %v3271_v29, %s2681_s30 }
 0x26f   :  { %v3289_v39 = vpop.permute.xlu1 %1569  ;;  %v3291_v42 = vpop.permute.xlu0 %861 }
 0x270   :  { %4765 = vst [vmem:[#allocation14_spill] sm:$0xff] %v3289_v39 }
 0x271   :  { %1235 = vrot.lane.b32.xlu1 %v3243_v16, %s2679_s28  ;;  %853 = vrot.lane.b32.xlu0 %v3271_v29, %s2682_s20 }
 0x273   :  { %v3298_v47 = vpop.permute.xlu1 %1449  ;;  %v3300_v48 = vpop.permute.xlu0 %1581 }
 0x274   :  { %4766 = vst [vmem:[#allocation15_spill] sm:$0xff] %v3298_v47  ;;  %4767 = vst [vmem:[#allocation16_spill] sm:$0xff] %v3300_v48 }
 0x275   :  { %1715 = vrot.lane.b32.xlu1 %v3243_v16, %s2675_s13  ;;  %1573 = vrot.lane.b32.xlu0 %v3271_v29, %s2676_s14 }
 0x277   :  { %v3306_v51 = vpop.permute.xlu1 %1329  ;;  %v3308_v53 = vpop.permute.xlu0 %1461 }
 0x278   :  { %4768 = vst [vmem:[#allocation17_spill] sm:$0xff] %v3306_v51  ;;  %4769 = vst [vmem:[#allocation18_spill] sm:$0xff] %v3308_v53 }
 0x279   :  { %1727 = vrot.lane.b32.xlu1 %v3228_v13, %s2675_s13  ;;  %1453 = vrot.lane.b32.xlu0 %v3271_v29, %s2677_s15 }
 0x27b   :  { %v3317_v56 = vpop.permute.xlu1 %1209  ;;  %v3319_v57 = vpop.permute.xlu0 %1341 }
 0x27c   :  { %4771 = vst [vmem:[#allocation20_spill] sm:$0xff] %v3317_v56  ;;  %4772 = vst [vmem:[#allocation21_spill] sm:$0xff] %v3319_v57 }
 0x27d   :  { %1105 = vrot.lane.b32.xlu1 %v3315_v54, %s2680_s29  ;;  %1333 = vrot.lane.b32.xlu0 %v3271_v29, %s2678_s27 }
 0x27f   :  { %v3327_v62 = vpop.permute.xlu1 %1689  ;;  %v3329_v63 = vpop.permute.xlu0 %1701 }
 0x280   :  { %4773 = vst [vmem:[#allocation22_spill] sm:$0xff] %v3327_v62  ;;  %4774 = vst [vmem:[#allocation23_spill] sm:$0xff] %v3329_v63 }
 0x281   :  { %985 = vrot.lane.b32.xlu1 %v3315_v54, %s2681_s30  ;;  %1213 = vrot.lane.b32.xlu0 %v3271_v29, %s2679_s28 }
 0x283   :  { %v3340_v19 = vpop.permute.xlu1 %1091  ;;  %v3342_v3 = vpop.permute.xlu0 %1103 }
 0x285   :  { %865 = vrot.lane.b32.xlu1 %v3315_v54, %s2682_s20  ;;  %1693 = vrot.lane.b32.xlu0 %v3271_v29, %s2675_s13  ;;  %v735_v29 = vmax.f32 %v622_v6, 0.0  ;;  %v742_v6 = vmax.f32 %v630_v17, 0.0 }
 0x287   :  { %v3351_v9 = vpop.permute.xlu1 %971  ;;  %v3353_v10 = vpop.permute.xlu0 %983  ;;  %v3451_v22 = vmul.f32 %v3262_v27, %v735_v29  ;;  %v3471_v25 = vmul.f32 %v3338_v1, %v742_v6 }
 0x289   :  { %1585 = vrot.lane.b32.xlu1 %v3315_v54, %s2676_s14  ;;  %1695 = vrot.lane.b32.xlu0 %v3349_v7, %s2675_s13  ;;  %4789 = vst [vmem:[#allocation38_spill] sm:$0xff] %v3451_v22 }
 0x28b   :  { %v3360_v15 = vpop.permute.xlu1 %851  ;;  %v3362_v20 = vpop.permute.xlu0 %863 }
 0x28d   :  { %1465 = vrot.lane.b32.xlu1 %v3315_v54, %s2677_s15  ;;  %1095 = vrot.lane.b32.xlu0 %v3349_v7, %s2680_s29 }
 0x28f   :  { %v3368_v37 = vpop.permute.xlu1 %1571  ;;  %v3370_v44 = vpop.permute.xlu0 %1583 }
 0x290   :  { %4775 = vst [vmem:[#allocation24_spill] sm:$0xff] %v3368_v37  ;;  %4776 = vst [vmem:[#allocation25_spill] sm:$0xff] %v3370_v44 }
 0x291   :  { %1345 = vrot.lane.b32.xlu1 %v3315_v54, %s2678_s27  ;;  %975 = vrot.lane.b32.xlu0 %v3349_v7, %s2681_s30 }
 0x293   :  { %v3381_v58 = vpop.permute.xlu1 %1451  ;;  %v3383_v0 = vpop.permute.xlu0 %1463 }
 0x294   :  { %4777 = vst [vmem:[#allocation26_spill] sm:$0xff] %v3381_v58  ;;  %4778 = vst [vmem:[#allocation27_spill] sm:$0xff] %v3383_v0  ;;  %v4690_v58 = vsub.s32 5, %v3102_v26 }
 0x295   :  { %987 = vrot.lane.b32.xlu1 %v3379_v50, %s2681_s30  ;;  %855 = vrot.lane.b32.xlu0 %v3349_v7, %s2682_s20 }
 0x297   :  { %v3390_v33 = vpop.permute.xlu1 %1331  ;;  %v3392_v59 = vpop.permute.xlu0 %1343 }
 0x298   :  { %4779 = vst [vmem:[#allocation28_spill] sm:$0xff] %v3390_v33  ;;  %4780 = vst [vmem:[#allocation29_spill] sm:$0xff] %v3392_v59  ;;  %v624_v33 = vadd.f32 %v3372_v46, %v3099_v40 }
 0x299   :  { %867 = vrot.lane.b32.xlu1 %v3379_v50, %s2682_s20  ;;  %1575 = vrot.lane.b32.xlu0 %v3349_v7, %s2676_s14 }
 0x29b   :  { %v3398_v23 = vpop.permute.xlu1 %1211  ;;  %v3400_v18 = vpop.permute.xlu0 %1713 }
 0x29c   :  { %4781 = vst [vmem:[#allocation30_spill] sm:$0xff] %v3398_v23  ;;  %4782 = vst [vmem:[#allocation31_spill] sm:$0xff] %v3400_v18  ;;  %v698_v23 = vpop.f32.mrf.mxu0  ;;  %v4684_v18 = vsub.s32 4, %v3102_v26 }
 0x29d   :  { %1467 = vrot.lane.b32.xlu1 %v3379_v50, %s2677_s15  ;;  %1455 = vrot.lane.b32.xlu0 %v3349_v7, %s2677_s15  ;;  %v699_v6 = vadd.f32 %v698_v23, %v3105_v38 }
 0x29e   :  { %v700_v47 = vpop.f32.mrf.mxu0 }
 0x29f   :  { %v3409_v55 = vpop.permute.xlu1 %1691  ;;  %v3411_v4 = vpop.permute.xlu0 %1125 }
 0x2a0   :  { %4784 = vst [vmem:[#allocation33_spill] sm:$0xff] %v3409_v55  ;;  %v704_v26 = vpop.f32.mrf.mxu0 }
 0x2a1   :  { %1129 = vrot.lane.b32.xlu1 %v3407_v12, %s2680_s29  ;;  %1225 = vrot.lane.b32.xlu0 %v3315_v54, %s2679_s28 }
 0x2a3   :  { %v3417_v14 = vpop.permute.xlu1 %1221  ;;  %v3419_v41 = vpop.permute.xlu0 %1005 }
 0x2a4   :  { %4785 = vst [vmem:[#allocation34_spill] sm:$0xff] %v3417_v14 }
 0x2a5   :  { %1009 = vrot.lane.b32.xlu1 %v3407_v12, %s2681_s30  ;;  %1705 = vrot.lane.b32.xlu0 %v3315_v54, %s2675_s13 }
 0x2a7   :  { %v3425_v24 = vpop.permute.xlu1 %1223  ;;  %v3427_v11 = vpop.permute.xlu0 %885 }
 0x2a8   :  { %4786 = vst [vmem:[#allocation35_spill] sm:$0xff] %v3425_v24 }
 0x2a9   :  { %889 = vrot.lane.b32.xlu1 %v3407_v12, %s2682_s20  ;;  %1707 = vrot.lane.b32.xlu0 %v3379_v50, %s2675_s13 }
 0x2ab   :  { %v3434_v45 = vpop.permute.xlu1 %1703  ;;  %v3436_v43 = vpop.permute.xlu0 %1605 }
 0x2ac   :  { %4787 = vst [vmem:[#allocation36_spill] sm:$0xff] %v3434_v45 }
 0x2ad   :  { %1609 = vrot.lane.b32.xlu1 %v3407_v12, %s2676_s14  ;;  %1107 = vrot.lane.b32.xlu0 %v3379_v50, %s2680_s29 }
 0x2af   :  { %v3442_v54 = vpop.permute.xlu1 %1113  ;;  %v3444_v21 = vpop.permute.xlu0 %1485 }
 0x2b0   :  { %4788 = vst [vmem:[#allocation37_spill] sm:$0xff] %v3444_v21 }
 0x2b1   :  { %1489 = vrot.lane.b32.xlu1 %v3407_v12, %s2677_s15  ;;  %1587 = vrot.lane.b32.xlu0 %v3379_v50, %s2676_s14 }
 0x2b3   :  { %v3454_v62 = vpop.permute.xlu1 %993  ;;  %v3456_v55 = vpop.permute.xlu0 %1365 }
 0x2b4   :  { %4790 = vst [vmem:[#allocation39_spill] sm:$0xff] %v3456_v55 }
 0x2b5   :  { %1369 = vrot.lane.b32.xlu1 %v3407_v12, %s2678_s27  ;;  %1117 = vrot.lane.b32.xlu0 %v3451_v22, %s2680_s29 }
 0x2b7   :  { %v3462_v63 = vpop.permute.xlu1 %873  ;;  %v3464_v56 = vpop.permute.xlu0 %1245 }
 0x2b8   :  { %4791 = vst [vmem:[#allocation40_spill] sm:$0xff] %v3464_v56  ;;  %v3502_v56 = vrot.slane %v3110_v36, %v4684_v18 }
 0x2b9   :  { %1249 = vrot.lane.b32.xlu1 %v3407_v12, %s2679_s28  ;;  %997 = vrot.lane.b32.xlu0 %v3451_v22, %s2681_s30 }
 0x2bb   :  { %v3473_v27 = vpop.permute.xlu1 %1593  ;;  %v3475_v29 = vpop.permute.xlu0 %1725 }
 0x2bc   :  { %4792 = vst [vmem:[#allocation41_spill] sm:$0xff] %v3473_v27  ;;  %4793 = vst [vmem:[#allocation42_spill] sm:$0xff] %v3475_v29  ;;  %v725_v29 = vmax.f32 %v699_v6, 0.0 }
 0x2bd   :  { %1731 = vrot.lane.b32.xlu1 %v3471_v25, %s2675_s13  ;;  %877 = vrot.lane.b32.xlu0 %v3451_v22, %s2682_s20 }
 0x2be   :  { %v3515_v6 = vmul.f32 %v3502_v56, %v725_v29 }
 0x2bf   :  { %v3481_v17 = vpop.permute.xlu1 %1473  ;;  %v3483_v45 = vpop.permute.xlu0 %1127 }
 0x2c0   :  { %4794 = vst [vmem:[#allocation43_spill] sm:$0xff] %v3481_v17  ;;  %4797 = vst [vmem:[#allocation46_spill] sm:$0xff] %v3515_v6  ;;  %v3594_v17 = vld [vmem:[%s4650_s5 + $0x8] sm:$0xff] }
 0x2c1   :  { %1011 = vrot.lane.b32.xlu1 %v3471_v25, %s2681_s30  ;;  %1597 = vrot.lane.b32.xlu0 %v3451_v22, %s2676_s14  ;;  %4807 = vst [vmem:[#allocation56_spill] sm:$0xff] %v3594_v17 }
 0x2c2   :  { %2102 = vmatprep.mubr.f32.mxu1 %v3594_v17 }
 0x2c3   :  { %v3491_v14 = vpop.permute.xlu1 %1353  ;;  %v3493_v24 = vpop.permute.xlu0 %1007 }
 0x2c4   :  { %4795 = vst [vmem:[#allocation44_spill] sm:$0xff] %v3491_v14 }
 0x2c5   :  { %891 = vrot.lane.b32.xlu1 %v3471_v25, %s2682_s20  ;;  %1477 = vrot.lane.b32.xlu0 %v3451_v22, %s2677_s15 }
 0x2c7   :  { %v3504_v51 = vpop.permute.xlu1 %1233  ;;  %v3506_v23 = vpop.permute.xlu0 %887 }
 0x2c8   :  { %4796 = vst [vmem:[#allocation45_spill] sm:$0xff] %v3504_v51  ;;  %v736_v51 = vmax.f32 %v624_v33, 0.0  ;;  %v701_v33 = vadd.f32 %v700_v47, %v3105_v38 }
 0x2c9   :  { %1491 = vrot.lane.b32.xlu1 %v3471_v25, %s2677_s15  ;;  %1357 = vrot.lane.b32.xlu0 %v3451_v22, %s2678_s27 }
 0x2ca   :  { %v3534_v46 = vmul.f32 %v3338_v1, %v736_v51  ;;  %v726_v51 = vmax.f32 %v701_v33, 0.0  ;;  %v3557_v1 = vrot.slane %v3110_v36, %v4690_v58 }
 0x2cb   :  { %v3517_v57 = vpop.permute.xlu1 %1115  ;;  %v3519_v18 = vpop.permute.xlu0 %1607 }
 0x2cc   :  { %v3568_v47 = vmul.f32 %v3557_v1, %v726_v51  ;;  %v705_v51 = vadd.f32 %v704_v26, %v3042_v32 }
 0x2cd   :  { %1697 = vrot.lane.b32.xlu1 %v3515_v6, %s2675_s13  ;;  %1237 = vrot.lane.b32.xlu0 %v3451_v22, %s2679_s28 }
 0x2ce   :  { %4802 = vst [vmem:[#allocation51_spill] sm:$0xff] %v3568_v47 }
 0x2cf   :  { %v3525_v59 = vpop.permute.xlu1 %995  ;;  %v3527_v14 = vpop.permute.xlu0 %1487 }
 0x2d0   :  { %4798 = vst [vmem:[#allocation47_spill] sm:$0xff] %v3527_v14 }
 0x2d1   :  { %1097 = vrot.lane.b32.xlu1 %v3515_v6, %s2680_s29  ;;  %1717 = vrot.lane.b32.xlu0 %v3451_v22, %s2675_s13 }
 0x2d3   :  { %v3536_v29 = vpop.permute.xlu1 %875  ;;  %v3538_v55 = vpop.permute.xlu0 %1367 }
 0x2d4   :  { %4799 = vst [vmem:[#allocation48_spill] sm:$0xff] %v3538_v55 }
 0x2d5   :  { %977 = vrot.lane.b32.xlu1 %v3515_v6, %s2681_s30  ;;  %1719 = vrot.lane.b32.xlu0 %v3534_v46, %s2675_s13 }
 0x2d7   :  { %v3546_v53 = vpop.permute.xlu1 %1595  ;;  %v3548_v22 = vpop.permute.xlu0 %1247 }
 0x2d8   :  { %4800 = vst [vmem:[#allocation49_spill] sm:$0xff] %v3548_v22 }
 0x2d9   :  { %857 = vrot.lane.b32.xlu1 %v3515_v6, %s2682_s20  ;;  %1119 = vrot.lane.b32.xlu0 %v3534_v46, %s2680_s29 }
 0x2db   :  { %v3559_v55 = vpop.permute.xlu1 %1475  ;;  %v3561_v38 = vpop.permute.xlu0 %1093 }
 0x2dc   :  { %4801 = vst [vmem:[#allocation50_spill] sm:$0xff] %v3559_v55 }
 0x2dd   :  { %1577 = vrot.lane.b32.xlu1 %v3515_v6, %s2676_s14  ;;  %999 = vrot.lane.b32.xlu0 %v3534_v46, %s2681_s30 }
 0x2df   :  { %v3570_v22 = vpop.permute.xlu1 %1355  ;;  %v3572_v33 = vpop.permute.xlu0 %973 }
 0x2e0   :  { %4803 = vst [vmem:[#allocation52_spill] sm:$0xff] %v3570_v22 }
 0x2e1   :  { %1099 = vrot.lane.b32.xlu1 %v3568_v47, %s2680_s29  ;;  %879 = vrot.lane.b32.xlu0 %v3534_v46, %s2682_s20 }
 0x2e3   :  { %v3578_v36 = vpop.permute.xlu1 %1235  ;;  %v3580_v58 = vpop.permute.xlu0 %853 }
 0x2e4   :  { %4804 = vst [vmem:[#allocation53_spill] sm:$0xff] %v3578_v36  ;;  %v731_v36 = vmax.f32 %v705_v51, 0.0 }
 0x2e5   :  { %979 = vrot.lane.b32.xlu1 %v3568_v47, %s2681_s30  ;;  %1599 = vrot.lane.b32.xlu0 %v3534_v46, %s2676_s14 }
 0x2e6   :  { %v3610_v17 = vmul.f32 %v3502_v56, %v731_v36 }
 0x2e7   :  { %v3587_v22 = vpop.permute.xlu1 %1715  ;;  %v3589_v0 = vpop.permute.xlu0 %1573 }
 0x2e8   :  { %4805 = vst [vmem:[#allocation54_spill] sm:$0xff] %v3587_v22  ;;  %4806 = vst [vmem:[#allocation55_spill] sm:$0xff] %v3589_v0  ;;  %v706_v22 = vpop.f32.mrf.mxu0 }
 0x2e9   :  { %859 = vrot.lane.b32.xlu1 %v3568_v47, %s2682_s20  ;;  %1479 = vrot.lane.b32.xlu0 %v3534_v46, %s2677_s15  ;;  %4810 = vst [vmem:[#allocation59_spill] sm:$0xff] %v3610_v17 }
 0x2ea   :  { %v710_v39 = vpop.f32.mrf.mxu0 }
 0x2eb   :  { %v3601_v55 = vpop.permute.xlu1 %1727  ;;  %v3603_v26 = vpop.permute.xlu0 %1453  ;;  %v711_v51 = vadd.f32 %v710_v39, %v3099_v40  ;;  %v707_v39 = vadd.f32 %v706_v22, %v3042_v32 }
 0x2ec   :  { %4808 = vst [vmem:[#allocation57_spill] sm:$0xff] %v3601_v55  ;;  %4809 = vst [vmem:[#allocation58_spill] sm:$0xff] %v3603_v26 }
 0x2ed   :  { %1579 = vrot.lane.b32.xlu1 %v3568_v47, %s2676_s14  ;;  %1729 = vrot.lane.b32.xlu0 %v3407_v12, %s2675_s13  ;;  %v737_v36 = vmax.f32 %v711_v51, 0.0  ;;  %v732_v51 = vmax.f32 %v707_v39, 0.0 }
 0x2ef   :  { %v3612_v21 = vpop.permute.xlu1 %1105  ;;  %v3614_v14 = vpop.permute.xlu0 %1333  ;;  %v3658_v32 = vmul.f32 %v3557_v1, %v732_v51 }
 0x2f0   :  { %4811 = vst [vmem:[#allocation60_spill] sm:$0xff] %v3614_v14 }
 0x2f1   :  { %1709 = vrot.lane.b32.xlu1 %v3610_v17, %s2675_s13  ;;  %1131 = vrot.lane.b32.xlu0 %v3471_v25, %s2680_s29  ;;  %4819 = vst [vmem:[#allocation68_spill] sm:$0xff] %v3658_v32 }
 0x2f3   :  { %v3621_v55 = vpop.permute.xlu1 %985  ;;  %v3623_v26 = vpop.permute.xlu0 %1213 }
 0x2f4   :  { %4812 = vst [vmem:[#allocation61_spill] sm:$0xff] %v3623_v26  ;;  %v3639_v26 = vmul.f32 %v3502_v56, %v737_v36 }
 0x2f5   :  { %1109 = vrot.lane.b32.xlu1 %v3610_v17, %s2680_s29  ;;  %1611 = vrot.lane.b32.xlu0 %v3471_v25, %s2676_s14 }
 0x2f6   :  { %4814 = vst [vmem:[#allocation63_spill] sm:$0xff] %v3639_v26 }
 0x2f7   :  { %v3629_v12 = vpop.permute.xlu1 %865  ;;  %v3631_v14 = vpop.permute.xlu0 %1693 }
 0x2f8   :  { %4813 = vst [vmem:[#allocation62_spill] sm:$0xff] %v3631_v14 }
 0x2f9   :  { %1589 = vrot.lane.b32.xlu1 %v3610_v17, %s2676_s14  ;;  %989 = vrot.lane.b32.xlu0 %v3610_v17, %s2681_s30 }
 0x2fb   :  { %v3641_v37 = vpop.permute.xlu1 %1585  ;;  %v3643_v0 = vpop.permute.xlu0 %1695 }
 0x2fc   :  { %4815 = vst [vmem:[#allocation64_spill] sm:$0xff] %v3641_v37  ;;  %4816 = vst [vmem:[#allocation65_spill] sm:$0xff] %v3643_v0  ;;  %v712_v0 = vpop.f32.mrf.mxu0 }
 0x2fd   :  { %1721 = vrot.lane.b32.xlu1 %v3639_v26, %s2675_s13  ;;  %869 = vrot.lane.b32.xlu0 %v3610_v17, %s2682_s20  ;;  %v713_v51 = vadd.f32 %v712_v0, %v3099_v40 }
 0x2ff   :  { %v3649_v14 = vpop.permute.xlu1 %1465  ;;  %v3651_v48 = vpop.permute.xlu0 %1095 }
 0x300   :  { %4817 = vst [vmem:[#allocation66_spill] sm:$0xff] %v3649_v14  ;;  %4818 = vst [vmem:[#allocation67_spill] sm:$0xff] %v3651_v48  ;;  %v716_v14 = vpop.f32.mrf.mxu0 }
 0x301   :  { %1121 = vrot.lane.b32.xlu1 %v3639_v26, %s2680_s29  ;;  %1469 = vrot.lane.b32.xlu0 %v3610_v17, %s2677_s15  ;;  %v717_v44 = vadd.f32 %v716_v14, %v3037_v2 }
 0x303   :  { %v3660_v22 = vpop.permute.xlu1 %1345  ;;  %v3662_v36 = vpop.permute.xlu0 %975  ;;  %v743_v27 = vmax.f32 %v717_v44, 0.0 }
 0x304   :  { %4820 = vst [vmem:[#allocation69_spill] sm:$0xff] %v3660_v22  ;;  %4821 = vst [vmem:[#allocation70_spill] sm:$0xff] %v3662_v36 }
 0x305   :  { %1001 = vrot.lane.b32.xlu1 %v3639_v26, %s2681_s30  ;;  %1111 = vrot.lane.b32.xlu0 %v3658_v32, %s2680_s29 }
 0x307   :  { %v3668_v39 = vpop.permute.xlu1 %987  ;;  %v3670_v48 = vpop.permute.xlu0 %855 }
 0x308   :  { %4822 = vst [vmem:[#allocation71_spill] sm:$0xff] %v3668_v39  ;;  %4823 = vst [vmem:[#allocation72_spill] sm:$0xff] %v3670_v48  ;;  %v738_v48 = vmax.f32 %v713_v51, 0.0  ;;  %v3702_v51 = vmul.f32 %v3502_v56, %v743_v27 }
 0x309   :  { %881 = vrot.lane.b32.xlu1 %v3639_v26, %s2682_s20  ;;  %991 = vrot.lane.b32.xlu0 %v3658_v32, %s2681_s30 }
 0x30a   :  { %v3695_v40 = vmul.f32 %v3557_v1, %v738_v48  ;;  %4831 = vst [vmem:[#allocation80_spill] sm:$0xff] %v3702_v51  ;;  %v1155_v48 = vsel %vm175_vm5, %v3411_v4, %v3483_v45 }
 0x30b   :  { %v3677_v36 = vpop.permute.xlu1 %867  ;;  %v3679_v22 = vpop.permute.xlu0 %1575 }
 0x30c   :  { %4824 = vst [vmem:[#allocation73_spill] sm:$0xff] %v3677_v36  ;;  %4825 = vst [vmem:[#allocation74_spill] sm:$0xff] %v3679_v22  ;;  %v718_v22 = vpop.f32.mrf.mxu0 }
 0x30d   :  { %1601 = vrot.lane.b32.xlu1 %v3639_v26, %s2676_s14  ;;  %871 = vrot.lane.b32.xlu0 %v3658_v32, %s2682_s20  ;;  %4828 = vst [vmem:[#allocation77_spill] sm:$0xff] %v3695_v40 }
 0x30f   :  { %v3686_v39 = vpop.permute.xlu1 %1467  ;;  %v3688_v37 = vpop.permute.xlu0 %1455 }
 0x310   :  { %4826 = vst [vmem:[#allocation75_spill] sm:$0xff] %v3686_v39  ;;  %4827 = vst [vmem:[#allocation76_spill] sm:$0xff] %v3688_v37 }
 0x311   :  { %1481 = vrot.lane.b32.xlu1 %v3639_v26, %s2677_s15  ;;  %1591 = vrot.lane.b32.xlu0 %v3658_v32, %s2676_s14 }
 0x313   :  { %v3697_v0 = vpop.permute.xlu1 %1129  ;;  %v3699_v14 = vpop.permute.xlu0 %1225 }
 0x314   :  { %4829 = vst [vmem:[#allocation78_spill] sm:$0xff] %v3697_v0  ;;  %4830 = vst [vmem:[#allocation79_spill] sm:$0xff] %v3699_v14  ;;  %v1156_v44 = vsel %vm175_vm5, %v3483_v45, %v3697_v0  ;;  %v719_v0 = vadd.f32 %v718_v22, %v3037_v2  ;;  %v1144_v2 = vsel %vm175_vm5, %v3342_v3, %v3612_v21 }
 0x315   :  { %1123 = vrot.lane.b32.xlu1 %v3695_v40, %s2680_s29  ;;  %2038 = vmatprep.subr.mxu1 %v1156_v44 }
 0x316   :  { %1733 = vrot.lane.b32.xlu0 %v3702_v51, %s2675_s13  ;;  %2039 = vmatpush1.msra.mxu1 %v1155_v48 }
 0x317   :  { %v3714_v37 = vpop.permute.xlu1 %1009  ;;  %v3716_v56 = vpop.permute.xlu0 %1705 }
 0x318   :  { %4832 = vst [vmem:[#allocation81_spill] sm:$0xff] %v3716_v56  ;;  %v744_v56 = vmax.f32 %v719_v0, 0.0  ;;  %v1035_v0 = vsel %vm142_vm6, %v3419_v41, %v3493_v24  ;;  %v1024_v41 = vsel %vm142_vm6, %v3353_v10, %v3621_v55 }
 0x319   :  { %1003 = vrot.lane.b32.xlu1 %v3695_v40, %s2681_s30 }
 0x31a   :  { %1359 = vrot.lane.b32.xlu0 %v3534_v46, %s2678_s27 }
 0x31b   :  { %v3722_v27 = vpop.permute.xlu1 %889  ;;  %v3724_v44 = vpop.permute.xlu0 %1707 }
 0x31c   :  { %4833 = vst [vmem:[#allocation82_spill] sm:$0xff] %v3724_v44 }
 0x31d   :  { %883 = vrot.lane.b32.xlu1 %v3695_v40, %s2682_s20 }
 0x31e   :  { %1471 = vrot.lane.b32.xlu0 %v3658_v32, %s2677_s15 }
 0x31f   :  { %v3730_v4 = vpop.permute.xlu1 %1609  ;;  %v3732_v45 = vpop.permute.xlu0 %1107 }
 0x320   :  { %4834 = vst [vmem:[#allocation83_spill] sm:$0xff] %v3732_v45 }
 0x321   :  { %1603 = vrot.lane.b32.xlu1 %v3695_v40, %s2676_s14 }
 0x322   :  { %1013 = vrot.lane.b32.xlu0 %v3702_v51, %s2681_s30 }
 0x323   :  { %v3738_v48 = vpop.permute.xlu1 %1489  ;;  %v3740_v39 = vpop.permute.xlu0 %1587 }
 0x324   :  { %4835 = vst [vmem:[#allocation84_spill] sm:$0xff] %v3738_v48  ;;  %4836 = vst [vmem:[#allocation85_spill] sm:$0xff] %v3740_v39  ;;  %v1149_v39 = vsel %vm175_vm5, %v3442_v54, %v3517_v57  ;;  %v1138_v54 = vsel %vm175_vm5, %v3340_v19, %v3561_v38 }
 0x325   :  { %1133 = vrot.lane.b32.xlu1 %v3702_v51, %s2680_s29 }
 0x326   :  { %893 = vrot.lane.b32.xlu0 %v3702_v51, %s2682_s20 }
 0x327   :  { %v3746_v36 = vpop.permute.xlu1 %1369  ;;  %v3748_v45 = vpop.permute.xlu0 %1117 }
 0x328   :  { %4837 = vst [vmem:[#allocation86_spill] sm:$0xff] %v3746_v36  ;;  %4838 = vst [vmem:[#allocation87_spill] sm:$0xff] %v3748_v45  ;;  %v1150_v44 = vsel %vm175_vm5, %v3517_v57, %v3748_v45  ;;  %v1137_v57 = vsel %vm175_vm5, %v3264_v28, %v3340_v19  ;;  %v1029_v19 = vsel %vm142_vm6, %v3454_v62, %v3525_v59 }
 0x329   :  { %1457 = vrot.lane.b32.xlu1 %v3515_v6, %s2677_s15  ;;  %2040 = vmatprep.subr.mxu1 %v1150_v44  ;;  %v1143_v44 = vsel %vm175_vm5, %v3275_v31, %v3342_v3  ;;  %v1036_v31 = vsel %vm142_vm6, %v3493_v24, %v3714_v37  ;;  %v1017_v62 = vsel %vm142_vm6, %v3273_v30, %v3351_v9 }
 0x32a   :  { %1493 = vrot.lane.b32.xlu0 %v3702_v51, %s2677_s15  ;;  %2041 = vmatpush1.msra.mxu1 %v1149_v39 }
 0x32b   :  { %v3764_v22 = vpop.permute.xlu1 %1249  ;;  %2042 = vmatprep.subr.mxu1 %v1144_v2  ;;  %v3766_v45 = vpop.permute.xlu0 %997  ;;  %v3792_v2 = vmul.f32 %v3557_v1, %v744_v56  ;;  %v1023_v56 = vsel %vm142_vm6, %v3283_v35, %v3353_v10  ;;  %v916_v35 = vsel %vm109_vm7, %v3506_v23, %v3722_v27 }
 0x32c   :  { %4839 = vst [vmem:[#allocation88_spill] sm:$0xff] %v3764_v22  ;;  %2043 = vmatpush1.msra.mxu1 %v1143_v44  ;;  %v1030_v28 = vsel %vm142_vm6, %v3525_v59, %v3766_v45  ;;  %v1018_v59 = vsel %vm142_vm6, %v3351_v9, %v3572_v33  ;;  %v909_v9 = vsel %vm109_vm7, %v3462_v63, %v3536_v29 }
 0x32d   :  { %1371 = vrot.lane.b32.xlu1 %v3471_v25, %s2678_s27  ;;  %2044 = vmatprep.subr.mxu1 %v1138_v54  ;;  %4840 = vst [vmem:[#allocation89_spill] sm:$0xff] %v3792_v2  ;;  %v915_v54 = vsel %vm109_vm7, %v3427_v11, %v3506_v23  ;;  %v904_v11 = vsel %vm109_vm7, %v3362_v20, %v3629_v12 }
 0x32e   :  { %1373 = vrot.lane.b32.xlu0 %v3702_v51, %s2678_s27  ;;  %2045 = vmatpush1.msra.mxu1 %v1137_v57  ;;  %v898_v63 = vsel %vm109_vm7, %v3360_v15, %v3580_v58 }
 0x32f   :  { %v3784_v3 = vpop.permute.xlu1 %1731  ;;  %2046 = vmatprep.subr.mxu1 %v1036_v31  ;;  %v3786_v39 = vpop.permute.xlu0 %877  ;;  %v903_v31 = vsel %vm109_vm7, %v3291_v42, %v3362_v20 }
 0x330   :  { %2047 = vmatpush1.msra.mxu1 %v1035_v0  ;;  %v910_v30 = vsel %vm109_vm7, %v3536_v29, %v3786_v39  ;;  %v897_v29 = vsel %vm109_vm7, %v3281_v34, %v3360_v15 }
 0x331   :  { %1483 = vrot.lane.b32.xlu1 %v3695_v40, %s2677_s15  ;;  %2048 = vmatprep.subr.mxu1 %v1030_v28 }
 0x332   :  { %1135 = vrot.lane.b32.xlu0 %v3792_v2, %s2680_s29  ;;  %2049 = vmatpush1.msra.mxu1 %v1029_v19 }
 0x333   :  { %v3807_v24 = vpop.permute.xlu1 %1011  ;;  %2050 = vmatprep.subr.mxu1 %v1024_v41  ;;  %v3809_v1 = vpop.permute.xlu0 %1597  ;;  %v4848_v41 = vld [vmem:[#allocation16_spill] sm:$0xff] }
 0x334   :  { %2051 = vmatpush1.msra.mxu1 %v1023_v56 }
 0x335   :  { %1361 = vrot.lane.b32.xlu1 %v3639_v26, %s2678_s27  ;;  %2052 = vmatprep.subr.mxu1 %v1018_v59  ;;  %v4849_v59 = vld [vmem:[#allocation55_spill] sm:$0xff] }
 0x336   :  { %1349 = vrot.lane.b32.xlu0 %v3610_v17, %s2678_s27  ;;  %2053 = vmatpush1.msra.mxu1 %v1017_v62 }
 0x337   :  { %v3827_v10 = vpop.permute.xlu1 %891  ;;  %2054 = vmatprep.subr.mxu1 %v916_v35  ;;  %v3829_v44 = vpop.permute.xlu0 %1477  ;;  %v4851_v35 = vld [vmem:[#allocation14_spill] sm:$0xff] }
 0x338   :  { %2055 = vmatpush1.msra.mxu1 %v915_v54 }
 0x339   :  { %1347 = vrot.lane.b32.xlu1 %v3379_v50, %s2678_s27  ;;  %2056 = vmatprep.subr.mxu1 %v910_v30  ;;  %v4852_v30 = vld [vmem:[#allocation47_spill] sm:$0xff] }
 0x33a   :  { %1015 = vrot.lane.b32.xlu0 %v3792_v2, %s2681_s30  ;;  %2057 = vmatpush1.msra.mxu1 %v909_v9  ;;  %v1516_v9 = vsel %vm274_vm2, %v4852_v30, %v3738_v48 }
 0x33b   :  { %v3847_v23 = vpop.permute.xlu1 %1491  ;;  %2058 = vmatprep.subr.mxu1 %v904_v11  ;;  %v3849_v57 = vpop.permute.xlu0 %1357 }
 0x33c   :  { %4841 = vst [vmem:[#allocation90_spill] sm:$0xff] %v3847_v23  ;;  %4842 = vst [vmem:[#allocation91_spill] sm:$0xff] %v3849_v57  ;;  %2059 = vmatpush1.msra.mxu1 %v903_v31  ;;  %v2467_v23 = vld [vmem:[%s4646_s1 + $0x18] sm:$0xff] }
 0x33d   :  { %1613 = vrot.lane.b32.xlu1 %v3702_v51, %s2676_s14  ;;  %2060 = vmatprep.subr.mxu1 %v898_v63  ;;  %v4854_v63 = vld [vmem:[#allocation37_spill] sm:$0xff] }
 0x33e   :  { %1335 = vrot.lane.b32.xlu0 %v3349_v7, %s2678_s27  ;;  %2061 = vmatpush1.msra.mxu1 %v897_v29  ;;  %v1515_v29 = vsel %vm274_vm2, %v4854_v63, %v4852_v30  ;;  %v4861_v30 = vld [vmem:[#allocation26_spill] sm:$0xff]  ;;  %v4862_v63 = vld [vmem:[#allocation15_spill] sm:$0xff] }
 0x33f   :  { %v3864_v0 = vpop.permute.xlu1 %1697  ;;  %2062 = vmatprep.subr.mxu1 %v3228_v13  ;;  %v3867_v42 = vpop.permute.xlu0 %1237  ;;  %v4845_v13 = vld [vmem:[#allocation41_spill] sm:$0xff] }
 0x340   :  { %4843 = vst [vmem:[#allocation92_spill] sm:$0xff] %v3864_v0  ;;  %4844 = vst [vmem:[#allocation93_spill] sm:$0xff] %v3867_v42  ;;  %2063 = vmatpush1.msra.mxu1 %v3193_v8 }
 0x341   :  { %1459 = vrot.lane.b32.xlu1 %v3568_v47, %s2677_s15  ;;  %2064 = vmatprep.subr.mxu1 %v3243_v16  ;;  %v1629_v16 = vsel %vm307_vm1, %v4845_v13, %v3546_v53 }
 0x342   :  { %895 = vrot.lane.b32.xlu0 %v3792_v2, %s2682_s20  ;;  %2065 = vmatpush1.msra.mxu1 %v3187_v5  ;;  %v1636_v5 = vsel %vm307_vm1, %v3519_v18, %v3730_v4 }
 0x343   :  { %v3876_v34 = vpop.permute.xlu1 %1097  ;;  %2066 = vmatprep.subr.mxu1 %v3159_v61  ;;  %v3879_v15 = vpop.permute.xlu0 %1717 }
 0x344   :  { %2067 = vmatpush1.msra.mxu1 %v3121_v52  ;;  %v1635_v52 = vsel %vm307_vm1, %v3436_v43, %v3519_v18  ;;  %v4846_v43 = vld [vmem:[#allocation64_spill] sm:$0xff]  ;;  %v4847_v18 = vld [vmem:[#allocation25_spill] sm:$0xff] }
 0x345   :  { %1337 = vrot.lane.b32.xlu1 %v3515_v6, %s2678_s27  ;;  %2068 = vmatprep.subr.mxu1 %v3157_v60  ;;  %v1624_v20 = vsel %vm307_vm1, %v4847_v18, %v4846_v43  ;;  %v1623_v56 = vsel %vm307_vm1, %v4848_v41, %v4847_v18  ;;  %v4858_v18 = vld [vmem:[#allocation27_spill] sm:$0xff]  ;;  %v4906_v43 = vld [vmem:[#allocation82_spill] sm:$0xff] }
 0x346   :  { %1253 = vrot.lane.b32.xlu0 %v3702_v51, %s2679_s28  ;;  %2069 = vmatpush1.msra.mxu1 %v3116_v49  ;;  %v1630_v49 = vsel %vm307_vm1, %v3546_v53, %v3809_v1  ;;  %v4850_v53 = vld [vmem:[#allocation24_spill] sm:$0xff] }
 0x347   :  { %v3891_v8 = vpop.permute.xlu1 %977  ;;  %2070 = vmatprep.subr.mxu1 %v1636_v5  ;;  %v3893_v61 = vpop.permute.xlu0 %1719  ;;  %v1618_v62 = vsel %vm307_vm1, %v4850_v53, %v4849_v59  ;;  %v1617_v54 = vsel %vm307_vm1, %v4851_v35, %v4850_v53  ;;  %v4855_v5 = vld [vmem:[#allocation50_spill] sm:$0xff] }
 0x348   :  { %v3901_v60 = vsel %vm340_vm0, %v3879_v15, %v3893_v61  ;;  %2071 = vmatpush2.msra.mxu1 %v1635_v52  ;;  %v1510_v52 = vsel %vm274_vm2, %v4855_v5, %v3829_v44  ;;  %v4859_v53 = vld [vmem:[#allocation18_spill] sm:$0xff] }
 0x349   :  { %1251 = vrot.lane.b32.xlu1 %v3471_v25, %s2679_s28  ;;  %2072 = vmatprep.subr.mxu1 %v1630_v49  ;;  %v4856_v49 = vld [vmem:[#allocation43_spill] sm:$0xff] }
 0x34a   :  { %1239 = vrot.lane.b32.xlu0 %v3534_v46, %s2679_s28  ;;  %2073 = vmatpush2.msra.mxu1 %v1629_v16  ;;  %v1509_v13 = vsel %vm274_vm2, %v4856_v49, %v4855_v5  ;;  %v4857_v16 = vld [vmem:[#allocation66_spill] sm:$0xff]  ;;  %v4863_v5 = vld [vmem:[#allocation48_spill] sm:$0xff] }
 0x34b   :  { %v3916_v28 = vpop.permute.xlu1 %857  ;;  %2074 = vmatprep.subr.mxu1 %v1624_v20  ;;  %v3918_v19 = vpop.permute.xlu0 %1119  ;;  %v1504_v20 = vsel %vm274_vm2, %v4858_v18, %v4857_v16  ;;  %v4885_v16 = vld [vmem:[#allocation54_spill] sm:$0xff] }
 0x34c   :  { %2075 = vmatpush2.msra.mxu1 %v1623_v56 }
 0x34d   :  { %1363 = vrot.lane.b32.xlu1 %v3695_v40, %s2678_s27  ;;  %2076 = vmatprep.subr.mxu1 %v1618_v62  ;;  %v1503_v62 = vsel %vm274_vm2, %v4859_v53, %v4858_v18  ;;  %v4864_v18 = vld [vmem:[#allocation39_spill] sm:$0xff] }
 0x34e   :  { %1351 = vrot.lane.b32.xlu0 %v3658_v32, %s2678_s27  ;;  %2077 = vmatpush2.msra.mxu1 %v1617_v54  ;;  %v4860_v54 = vld [vmem:[#allocation58_spill] sm:$0xff] }
 0x34f   :  { %v3936_v11 = vpop.permute.xlu1 %1577  ;;  %2078 = vmatprep.subr.mxu1 %v1516_v9  ;;  %v3938_v31 = vpop.permute.xlu0 %999  ;;  %v1498_v9 = vsel %vm274_vm2, %v4861_v30, %v4860_v54  ;;  %v4877_v54 = vld [vmem:[#allocation40_spill] sm:$0xff] }
 0x350   :  { %4853 = vst [vmem:[#allocation41_spill] sm:$0xff] %v3936_v11  ;;  %2079 = vmatpush2.msra.mxu1 %v1515_v29  ;;  %v1497_v29 = vsel %vm274_vm2, %v4862_v63, %v4861_v30  ;;  %v4865_v30 = vld [vmem:[#allocation52_spill] sm:$0xff] }
 0x351   :  { %1241 = vrot.lane.b32.xlu1 %v3639_v26, %s2679_s28  ;;  %2080 = vmatprep.subr.mxu1 %v1510_v52  ;;  %v1396_v52 = vsel %vm241_vm3, %v4863_v5, %v3746_v36  ;;  %v4866_v63 = vld [vmem:[#allocation44_spill] sm:$0xff] }
 0x352   :  { %1615 = vrot.lane.b32.xlu0 %v3792_v2, %s2676_s14  ;;  %2081 = vmatpush2.msra.mxu1 %v1509_v13 }
 0x353   :  { %v3956_v41 = vpop.permute.xlu1 %1099  ;;  %2082 = vmatprep.subr.mxu1 %v1504_v20  ;;  %v3958_v56 = vpop.permute.xlu0 %879  ;;  %v1395_v20 = vsel %vm241_vm3, %v4864_v18, %v4863_v5  ;;  %v4867_v5 = vld [vmem:[#allocation69_spill] sm:$0xff] }
 0x354   :  { %v3966_v35 = vsel %vm175_vm5, %v3876_v34, %v3956_v41  ;;  %2083 = vmatpush2.msra.mxu1 %v1503_v62 }
 0x355   :  { %1227 = vrot.lane.b32.xlu1 %v3379_v50, %s2679_s28  ;;  %2084 = vmatprep.subr.mxu1 %v1498_v9  ;;  %v1390_v9 = vsel %vm241_vm3, %v4865_v30, %v3849_v57  ;;  %v4870_v57 = vld [vmem:[#allocation21_spill] sm:$0xff] }
 0x356   :  { %1229 = vrot.lane.b32.xlu0 %v3610_v17, %s2679_s28  ;;  %2085 = vmatpush2.msra.mxu1 %v1497_v29  ;;  %v1389_v29 = vsel %vm241_vm3, %v4866_v63, %v4865_v30 }
 0x357   :  { %v3981_v49 = vpop.permute.xlu1 %979  ;;  %2086 = vmatprep.subr.mxu1 %v1396_v52  ;;  %v3983_v13 = vpop.permute.xlu0 %1599 }
 0x358   :  { %v3991_v53 = vsel %vm142_vm6, %v3891_v8, %v3981_v49  ;;  %v3996_v62 = vsel %vm307_vm1, %v3809_v1, %v3983_v13  ;;  %2087 = vmatpush2.msra.mxu1 %v1395_v20  ;;  %v4868_v1 = vld [vmem:[#allocation29_spill] sm:$0xff] }
 0x359   :  { %1339 = vrot.lane.b32.xlu1 %v3568_v47, %s2678_s27  ;;  %2088 = vmatprep.subr.mxu1 %v1390_v9  ;;  %v1384_v52 = vsel %vm241_vm3, %v4868_v1, %v4867_v5  ;;  %v1383_v9 = vsel %vm241_vm3, %v4870_v57, %v4868_v1  ;;  %v4873_v5 = vld [vmem:[#allocation28_spill] sm:$0xff]  ;;  %v4874_v57 = vld [vmem:[#allocation17_spill] sm:$0xff] }
 0x35a   :  { %1495 = vrot.lane.b32.xlu0 %v3792_v2, %s2677_s15  ;;  %2089 = vmatpush2.msra.mxu1 %v1389_v29  ;;  %v4872_v29 = vld [vmem:[#allocation60_spill] sm:$0xff]  ;;  %v1377_v1 = vsel %vm241_vm3, %v4874_v57, %v4873_v5  ;;  %v4879_v57 = vld [vmem:[#allocation53_spill] sm:$0xff] }
 0x35b   :  { %v4011_v18 = vpop.permute.xlu1 %859  ;;  %2090 = vmatprep.subr.mxu1 %v1384_v52  ;;  %v4013_v20 = vpop.permute.xlu0 %1479  ;;  %v1378_v52 = vsel %vm241_vm3, %v4873_v5, %v4872_v29 }
 0x35c   :  { %4869 = vst [vmem:[#allocation25_spill] sm:$0xff] %v4013_v20  ;;  %v4021_v30 = vsel %vm109_vm7, %v3916_v28, %v4011_v18  ;;  %v4026_v63 = vsel %vm274_vm2, %v3829_v44, %v4013_v20  ;;  %2091 = vmatpush2.msra.mxu1 %v1383_v9  ;;  %v4875_v44 = vld [vmem:[#allocation49_spill] sm:$0xff] }
 0x35d   :  { %4871 = vst [vmem:[#allocation16_spill] sm:$0xff] %v4026_v63  ;;  %1217 = vrot.lane.b32.xlu1 %v3515_v6, %s2679_s28  ;;  %2092 = vmatprep.subr.mxu1 %v1378_v52  ;;  %v1276_v9 = vsel %vm208_vm4, %v4875_v44, %v3764_v22  ;;  %v1275_v52 = vsel %vm208_vm4, %v4877_v54, %v4875_v44  ;;  %v4880_v22 = vld [vmem:[#allocation57_spill] sm:$0xff]  ;;  %v4113_v63 = vld [vmem:[%s4650_s5 + $0x10] sm:$0xff] }
 0x35e   :  { %1215 = vrot.lane.b32.xlu0 %v3349_v7, %s2679_s28  ;;  %2093 = vmatpush2.msra.mxu1 %v1377_v1  ;;  %v1270_v1 = vsel %vm208_vm4, %v4879_v57, %v3867_v42  ;;  %v4881_v54 = vld [vmem:[#allocation45_spill] sm:$0xff]  ;;  %4895 = vst [vmem:[#allocation50_spill] sm:$0xff] %v4113_v63 }
 0x35f   :  { %v4041_v36 = vpop.permute.xlu1 %1579  ;;  %2094 = vmatprep.subr.mxu1 %v1276_v9  ;;  %v4043_v29 = vpop.permute.xlu0 %1729  ;;  %v1269_v44 = vsel %vm208_vm4, %v4881_v54, %v4879_v57  ;;  %v4886_v57 = vld [vmem:[#allocation34_spill] sm:$0xff] }
 0x360   :  { %4876 = vst [vmem:[#allocation24_spill] sm:$0xff] %v4041_v36  ;;  %v4051_v5 = vsel %vm307_vm1, %v3936_v11, %v4041_v36  ;;  %2095 = vmatpush2.msra.mxu1 %v1275_v52  ;;  %v1756_v9 = vsel %vm340_vm0, %v4880_v22, %v4043_v29  ;;  %v4882_v52 = vld [vmem:[#allocation42_spill] sm:$0xff]  ;;  %v4884_v36 = vld [vmem:[#allocation35_spill] sm:$0xff] }
 0x361   :  { %4878 = vst [vmem:[#allocation14_spill] sm:$0xff] %v4051_v5  ;;  %1243 = vrot.lane.b32.xlu1 %v3695_v40, %s2679_s28  ;;  %2096 = vmatprep.subr.mxu1 %v1270_v1  ;;  %v1755_v42 = vsel %vm340_vm0, %v4882_v52, %v4880_v22  ;;  %v1264_v1 = vsel %vm208_vm4, %v4884_v36, %v3699_v14 }
 0x362   :  { %1375 = vrot.lane.b32.xlu0 %v3792_v2, %s2678_s27  ;;  %2133 = vmatprep.subr.mxu0 %v1756_v9  ;;  %v1750_v9 = vsel %vm340_vm0, %v4885_v16, %v3879_v15  ;;  %v1263_v22 = vsel %vm208_vm4, %v4886_v57, %v4884_v36  ;;  %v4888_v15 = vld [vmem:[#allocation61_spill] sm:$0xff]  ;;  %v4893_v57 = vld [vmem:[#allocation20_spill] sm:$0xff] }
 0x363   :  { %2097 = vmatpush2.msra.mxu1 %v1269_v44  ;;  %2134 = vmatpush1.msra.mxu0 %v1755_v42  ;;  %v4069_v5 = vpop.permute.xlu1 %1709  ;;  %v4077_v6 = vpop.permute.xlu0 %1131  ;;  %v4887_v42 = vld [vmem:[#allocation31_spill] sm:$0xff]  ;;  %v4889_v44 = vld [vmem:[#allocation30_spill] sm:$0xff] }
 0x364   :  { %4883 = vst [vmem:[#allocation47_spill] sm:$0xff] %v4069_v5  ;;  %2098 = vmatprep.subr.mxu1 %v1264_v1  ;;  %2135 = vmatprep.subr.mxu0 %v1750_v9  ;;  %v1749_v54 = vsel %vm340_vm0, %v4887_v42, %v4885_v16  ;;  %v1258_v52 = vsel %vm208_vm4, %v4889_v44, %v4888_v15  ;;  %v4890_v1 = vld [vmem:[#allocation81_spill] sm:$0xff]  ;;  %v4891_v9 = vld [vmem:[#allocation36_spill] sm:$0xff]  ;;  %v4894_v42 = vld [vmem:[#allocation23_spill] sm:$0xff] }
 0x365   :  { %2099 = vmatpush2.msra.mxu1 %v1263_v22  ;;  %2136 = vmatpush1.msra.mxu0 %v1749_v54  ;;  %v1744_v36 = vsel %vm340_vm0, %v4891_v9, %v4890_v1  ;;  %v4098_v16 = vld [vmem:[%s4650_s5] sm:$0xff]  ;;  %v1257_v22 = vsel %vm208_vm4, %v4893_v57, %v4889_v44  ;;  %v1743_v54 = vsel %vm340_vm0, %v4894_v42, %v4891_v9  ;;  %v4898_v44 = vld [vmem:[#allocation22_spill] sm:$0xff]  ;;  %v4899_v42 = vmov 0.0  }
 0x366   :  { %1231 = vrot.lane.b32.xlu1 %v3658_v32, %s2679_s28  ;;  %1723 = vrot.lane.b32.xlu0 %v3695_v40, %s2675_s13  ;;  %4892 = vst [vmem:[#allocation37_spill] sm:$0xff] %v4098_v16  ;;  %v2469_v40 = vld [vmem:[%s4646_s1 + $0x28] sm:$0xff] }
 0x367   :  { %2100 = vmatprep.subr.mxu1 %v1258_v52  ;;  %2137 = vmatprep.subr.mxu0 %v1744_v36  ;;  %v4106_v15 = vpop.permute.xlu1 %1109  ;;  %v4108_v14 = vpop.permute.xlu0 %1611  ;;  %v4896_v52 = vld [vmem:[#allocation62_spill] sm:$0xff]  ;;  %v4897_v36 = vld [vmem:[#allocation33_spill] sm:$0xff] }
 0x368   :  { %2101 = vmatpush2.msra.mxu1 %v1257_v22  ;;  %2138 = vmatpush1.msra.mxu0 %v1743_v54  ;;  %v1738_v17 = vsel %vm340_vm0, %v4897_v36, %v4896_v52  ;;  %v1737_v9 = vsel %vm340_vm0, %v4898_v44, %v4897_v36  ;;  %v2464_v44 = vld [vmem:[%s4646_s1] sm:$0xff] }
 0x369   :  { %2103 = vmatmul.mubr.f32.vlgmr.msra.gmra.mxu1 %v4098_v16  ;;  %2139 = vmatprep.subr.mxu0 %v1738_v17  ;;  %v4900_v17 = vld [vmem:[#allocation56_spill] sm:$0xff]  ;;  %v2466_v16 = vld [vmem:[%s4646_s1 + $0x10] sm:$0xff] }
 0x36a   :  { %2140 = vmatpush1.msra.mxu0 %v1737_v9  ;;  %1219 = vrot.lane.b32.xlu1 %v3568_v47, %s2679_s28 }
 0x36b   :  { %1255 = vrot.lane.b32.xlu0 %v3792_v2, %s2679_s28  ;;  %2654 = vmatmul.mubr.msk.f32.vlgmr.msra.gmra.mxu0 %vm2034_vm9, %v4113_v63  ;;  %v4128_v57 = vpop.permute.xlu1 %1589  ;;  %v4130_v22 = vpop.permute.xlu0 %989 }
 0x36c   :  { %2315 = vmatprep.mubr.f32.mxu1 %v4899_v42  ;;  %2244 = vmatprep.mubr.f32.mxu0 %v4900_v17 }
 0x36e   :  { %1699 = vrot.lane.b32.xlu1 %v3568_v47, %s2675_s13  ;;  %v2028_v47 = vld [vmem:[%s4651_s6] sm:$0xff] }
 0x36f   :  { %1735 = vrot.lane.b32.xlu0 %v3792_v2, %s2675_s13  ;;  %v4138_v54 = vpop.permute.xlu1 %1721  ;;  %v4140_v36 = vpop.permute.xlu0 %869 }
 0x370   :  { %4901 = vst [vmem:[#allocation43_spill] sm:$0xff] %v4138_v54 }
 0x372   :  { %2476 = vrot.lane.b32.xlu1 %v2464_v44, %s2675_s13 }
 0x373   :  { %1711 = vrot.lane.b32.xlu0 %v3658_v32, %s2675_s13  ;;  %v4148_v9 = vpop.permute.xlu1 %1121  ;;  %v4150_v42 = vpop.permute.xlu0 %1469  ;;  %v2465_v32 = vld [vmem:[%s4646_s1 + $0x8] sm:$0xff] }
 0x376   :  { %2480 = vrot.lane.b32.xlu1 %v2466_v16, %s2675_s13 }
 0x377   :  { %2031 = vperm.xlu0 %2669, %v2028_v47   ;;  %v4159_v20 = vpop.permute.xlu1 %1001  ;;  %v4161_v44 = vpop.permute.xlu0 %1111 }
 0x37b   :  { %v4166_v26 = vpop.permute.xlu1 %881  ;;  %v4168_v48 = vpop.permute.xlu0 %991  ;;  %2478 = vrot.lane.b32.xlu0 %v2465_v32, %s2675_s13 }
 0x37f   :  { %v4174_v16 = vpop.permute.xlu1 %1601  ;;  %v4176_v47 = vpop.permute.xlu0 %871  ;;  %2482 = vrot.lane.b32.xlu0 %v2467_v23, %s2675_s13 }
 0x383   :  { %v4182_v59 = vpop.permute.xlu1 %1481  ;;  %v4184_v51 = vpop.permute.xlu0 %1591  ;;  %2486 = vrot.lane.b32.xlu0 %v2469_v40, %s2675_s13 }
 0x384   :  { %4902 = vst [vmem:[#allocation27_spill] sm:$0xff] %v4182_v59  ;;  %4903 = vst [vmem:[#allocation18_spill] sm:$0xff] %v4184_v51  ;;  %v4190_v32 = vsel %vm307_vm1, %v4128_v57, %v4184_v51  ;;  %v1757_v59 = vsel %vm340_vm0, %v4043_v29, %v3784_v3  ;;  %v4907_v29 = vld [vmem:[#allocation65_spill] sm:$0xff] }
 0x385   :  { %4904 = vst [vmem:[#allocation26_spill] sm:$0xff] %v4190_v32  ;;  %v1752_v32 = vsel %vm340_vm0, %v3893_v61, %v4138_v54  ;;  %v1740_v61 = vsel %vm340_vm0, %v4907_v29, %v3864_v0  ;;  %v4910_v54 = vld [vmem:[#allocation83_spill] sm:$0xff] }
 0x387   :  { %v4192_v11 = vpop.permute.xlu1 %1123 }
 0x388   :  { %v4194_v2 = vpop.permute.xlu0 %1733 }
 0x389   :  { %4905 = vst [vmem:[#allocation15_spill] sm:$0xff] %v4194_v2  ;;  %v1758_v23 = vsel %vm340_vm0, %v3784_v3, %v4194_v2  ;;  %v1746_v2 = vsel %vm340_vm0, %v4906_v43, %v4069_v5  ;;  %v1745_v3 = vsel %vm340_vm0, %v4890_v1, %v4906_v43 }
 0x38a   :  { %2275 = vmatprep.subr.mxu1 %v1758_v23 }
 0x38b   :  { %2276 = vmatpush1.msra.mxu1 %v1757_v59  ;;  %v4202_v40 = vpop.permute.xlu1 %1003 }
 0x38c   :  { %2277 = vmatprep.subr.mxu1 %v1752_v32  ;;  %v4207_v51 = vpop.permute.xlu0 %1359 }
 0x38d   :  { %2278 = vmatpush1.msra.mxu1 %v3901_v60  ;;  %v1739_v60 = vsel %vm340_vm0, %v4896_v52, %v4907_v29  ;;  %v4908_v29 = vld [vmem:[#allocation78_spill] sm:$0xff] }
 0x38e   :  { %2279 = vmatprep.subr.mxu1 %v1746_v2 }
 0x38f   :  { %2280 = vmatpush1.msra.mxu1 %v1745_v3  ;;  %v4216_v59 = vpop.permute.xlu1 %883 }
 0x390   :  { %2281 = vmatprep.subr.mxu1 %v1740_v61  ;;  %v4221_v32 = vpop.permute.xlu0 %1471  ;;  %v1157_v61 = vsel %vm175_vm5, %v4908_v29, %v4077_v6  ;;  %v4911_v29 = vld [vmem:[#allocation67_spill] sm:$0xff] }
 0x391   :  { %v4229_v2 = vsel %vm274_vm2, %v4150_v42, %v4221_v32  ;;  %2282 = vmatpush1.msra.mxu1 %v1739_v60  ;;  %v1152_v60 = vsel %vm175_vm5, %v3918_v19, %v4148_v9 }
 0x392   :  { %2655 = vmatmul.mubr.msk.f32.vlgmr.msra.gmra.mxu1 %vm2034_vm9, %v4113_v63 }
 0x393   :  { %v4233_v43 = vpop.permute.xlu1 %1603  ;;  %2386 = vmatprep.mubr.f32.mxu1 %v4900_v17  ;;  %v4909_v17 = vld [vmem:[#allocation87_spill] sm:$0xff] }
 0x394   :  { %v4236_v1 = vpop.permute.xlu0 %1013  ;;  %v1151_v63 = vsel %vm175_vm5, %v4909_v17, %v3918_v19  ;;  %v1140_v19 = vsel %vm175_vm5, %v4911_v29, %v3876_v34  ;;  %v1032_v34 = vsel %vm142_vm6, %v3938_v31, %v4159_v20 }
 0x395   :  { %v1038_v17 = vsel %vm142_vm6, %v3807_v24, %v4236_v1 }
 0x397   :  { %v1134_v23 = vpop.permute.xlu1 %1133 }
 0x398   :  { %v4238_v3 = vpop.permute.xlu0 %893  ;;  %v1158_v52 = vsel %vm175_vm5, %v4077_v6, %v1134_v23  ;;  %v1146_v6 = vsel %vm175_vm5, %v4910_v54, %v4106_v15 }
 0x399   :  { %2180 = vmatprep.subr.mxu0 %v1158_v52  ;;  %v1145_v52 = vsel %vm175_vm5, %v3612_v21, %v4910_v54  ;;  %v1037_v21 = vsel %vm142_vm6, %v3714_v37, %v3807_v24  ;;  %v4913_v24 = vld [vmem:[#allocation9_spill] sm:$0xff] }
 0x39a   :  { %2181 = vmatpush1.msra.mxu0 %v1157_v61 }
 0x39b   :  { %v4251_v0 = vpop.permute.xlu1 %1457  ;;  %2182 = vmatprep.subr.mxu0 %v1152_v60 }
 0x39c   :  { %v4253_v5 = vpop.permute.xlu0 %1493  ;;  %2183 = vmatpush1.msra.mxu0 %v1151_v63  ;;  %v1139_v63 = vsel %vm175_vm5, %v3561_v38, %v4911_v29  ;;  %v1031_v38 = vsel %vm142_vm6, %v3766_v45, %v3938_v31  ;;  %v4914_v45 = vld [vmem:[#allocation70_spill] sm:$0xff] }
 0x39d   :  { %2184 = vmatprep.subr.mxu0 %v1146_v6  ;;  %v1020_v31 = vsel %vm142_vm6, %v4914_v45, %v3891_v8  ;;  %v918_v8 = vsel %vm109_vm7, %v3827_v10, %v4238_v3 }
 0x39e   :  { %2185 = vmatpush1.msra.mxu0 %v1145_v52  ;;  %v4912_v52 = vld [vmem:[#allocation71_spill] sm:$0xff] }
 0x39f   :  { %v4264_v61 = vpop.permute.xlu1 %1371  ;;  %2186 = vmatprep.subr.mxu0 %v1140_v19  ;;  %v1026_v29 = vsel %vm142_vm6, %v4912_v52, %v4130_v22 }
 0x3a0   :  { %v4269_v60 = vpop.permute.xlu0 %1373  ;;  %2187 = vmatpush1.msra.mxu0 %v1139_v63  ;;  %v1025_v63 = vsel %vm142_vm6, %v3621_v55, %v4912_v52  ;;  %v1153_v55 = vsel %vm175_vm5, %v4148_v9, %v4192_v11  ;;  %v912_v9 = vsel %vm109_vm7, %v3958_v56, %v4166_v26 }
 0x3a1   :  { %2188 = vmatprep.subr.mxu0 %v1038_v17 }
 0x3a2   :  { %2189 = vmatpush1.msra.mxu0 %v1037_v21  ;;  %v1019_v21 = vsel %vm142_vm6, %v3572_v33, %v4914_v45  ;;  %v1148_v33 = vsel %vm175_vm5, %v4161_v44, %v4913_v24  ;;  %v1027_v45 = vsel %vm142_vm6, %v4130_v22, %v4168_v48 }
 0x3a3   :  { %v4283_v54 = vpop.permute.xlu1 %1483  ;;  %2190 = vmatprep.subr.mxu0 %v1032_v34 }
 0x3a4   :  { %v1136_v6 = vpop.permute.xlu0 %1135  ;;  %2191 = vmatpush1.msra.mxu0 %v1031_v38  ;;  %v917_v38 = vsel %vm109_vm7, %v3722_v27, %v3827_v10  ;;  %v911_v27 = vsel %vm109_vm7, %v3786_v39, %v3958_v56  ;;  %v4916_v39 = vld [vmem:[#allocation10_spill] sm:$0xff] }
 0x3a5   :  { %v1159_v37 = vsel %vm175_vm5, %v1134_v23, %v1136_v6  ;;  %2192 = vmatprep.subr.mxu0 %v1026_v29  ;;  %v1160_v19 = vsel %vm175_vm5, %v1136_v6, %v4913_v24  ;;  %v1154_v23 = vsel %vm175_vm5, %v4192_v11, %v4913_v24  ;;  %v1147_v11 = vsel %vm175_vm5, %v4106_v15, %v4161_v44  ;;  %v4915_v44 = vld [vmem:[#allocation73_spill] sm:$0xff] }
 0x3a6   :  { %2322 = vmatprep.subr.mxu1 %v1160_v19  ;;  %2193 = vmatpush1.msra.mxu0 %v1025_v63  ;;  %v1142_v6 = vsel %vm175_vm5, %v3956_v41, %v4913_v24  ;;  %v906_v52 = vsel %vm109_vm7, %v4915_v44, %v4140_v36  ;;  %v905_v41 = vsel %vm109_vm7, %v3629_v12, %v4915_v44 }
 0x3a7   :  { %2323 = vmatpush1.msra.mxu1 %v1159_v37  ;;  %v4297_v17 = vpop.permute.xlu1 %1361  ;;  %2194 = vmatprep.subr.mxu0 %v1020_v31  ;;  %v4917_v37 = vld [vmem:[#allocation72_spill] sm:$0xff]  ;;  %v1033_v12 = vsel %vm142_vm6, %v4159_v20, %v4202_v40  ;;  %v4919_v31 = vld [vmem:[#allocation38_spill] sm:$0xff] }
 0x3a8   :  { %2324 = vmatprep.subr.mxu1 %v1154_v23  ;;  %v4308_v34 = vpop.permute.xlu0 %1349  ;;  %2195 = vmatpush1.msra.mxu0 %v1019_v21  ;;  %v900_v24 = vsel %vm109_vm7, %v4917_v37, %v3916_v28  ;;  %v1028_v28 = vsel %vm142_vm6, %v4168_v48, %v4916_v39  ;;  %v4920_v48 = vld [vmem:[#allocation11_spill] sm:$0xff] }
 0x3a9   :  { %2325 = vmatpush1.msra.mxu1 %v1153_v55  ;;  %2196 = vmatprep.subr.mxu0 %v918_v8  ;;  %v908_v8 = vsel %vm109_vm7, %v4176_v47, %v4920_v48 }
 0x3aa   :  { %2326 = vmatprep.subr.mxu1 %v1148_v33  ;;  %2197 = vmatpush1.msra.mxu0 %v917_v38 }
 0x3ab   :  { %2327 = vmatpush1.msra.mxu1 %v1147_v11  ;;  %v4328_v10 = vpop.permute.xlu1 %1347  ;;  %2198 = vmatprep.subr.mxu0 %v912_v9  ;;  %v4925_v11 = vld [vmem:[#allocation89_spill] sm:$0xff]  ;;  %v4927_v9 = vld [vmem:[#allocation74_spill] sm:$0xff] }
 0x3ac   :  { %2328 = vmatprep.subr.mxu1 %v1142_v6  ;;  %v1016_v15 = vpop.permute.xlu0 %1015  ;;  %2199 = vmatpush1.msra.mxu0 %v911_v27  ;;  %v4928_v6 = vld [vmem:[#allocation80_spill] sm:$0xff] }
 0x3ad   :  { %v1039_v29 = vsel %vm142_vm6, %v4236_v1, %v1016_v15  ;;  %2329 = vmatpush1.msra.mxu1 %v3966_v35  ;;  %2200 = vmatprep.subr.mxu0 %v906_v52  ;;  %v1040_v56 = vsel %vm142_vm6, %v1016_v15, %v4916_v39  ;;  %v1034_v35 = vsel %vm142_vm6, %v4202_v40, %v4916_v39  ;;  %v4930_v15 = vld [vmem:[#allocation77_spill] sm:$0xff]  ;;  %v4931_v52 = vld [vmem:[#allocation90_spill] sm:$0xff] }
 0x3ae   :  { %2330 = vmatprep.subr.mxu1 %v1040_v56  ;;  %2201 = vmatpush1.msra.mxu0 %v905_v41  ;;  %v899_v1 = vsel %vm109_vm7, %v3580_v58, %v4917_v37  ;;  %v4918_v58 = vld [vmem:[#allocation32_spill] sm:$0xff]  ;;  %v4933_v41 = vld [vmem:[#allocation63_spill] sm:$0xff] }
 0x3af   :  { %2331 = vmatpush1.msra.mxu1 %v1039_v29  ;;  %v4347_v19 = vpop.permute.xlu1 %1613  ;;  %2202 = vmatprep.subr.mxu0 %v900_v24  ;;  %v1518_v29 = vsel %vm274_vm2, %v4931_v52, %v4253_v5  ;;  %v4934_v37 = vld [vmem:[#allocation68_spill] sm:$0xff]  ;;  %v4935_v24 = vld [vmem:[#allocation27_spill] sm:$0xff] }
 0x3b0   :  { %2332 = vmatprep.subr.mxu1 %v1034_v35  ;;  %v4358_v63 = vpop.permute.xlu0 %1335  ;;  %2203 = vmatpush1.msra.mxu0 %v899_v1  ;;  %v1638_v55 = vsel %vm307_vm1, %v4108_v14, %v4347_v19  ;;  %v4936_v35 = vld [vmem:[#allocation25_spill] sm:$0xff] }
 0x3b1   :  { %2333 = vmatpush1.msra.mxu1 %v1033_v12  ;;  %2204 = vmatprep.subr.mxu0 %v3471_v25  ;;  %v1022_v25 = vsel %vm142_vm6, %v3981_v49, %v4916_v39  ;;  %v914_v49 = vsel %vm109_vm7, %v4216_v59, %v4920_v48  ;;  %v4932_v39 = vld [vmem:[#allocation84_spill] sm:$0xff]  ;;  %v1512_v1 = vsel %vm274_vm2, %v4936_v35, %v4935_v24  ;;  %v4937_v12 = vld [vmem:[#allocation59_spill] sm:$0xff] }
 0x3b2   :  { %2334 = vmatprep.subr.mxu1 %v1028_v28  ;;  %2205 = vmatpush1.msra.mxu0 %v4918_v58  ;;  %v1517_v56 = vsel %vm274_vm2, %v4932_v39, %v4931_v52  ;;  %v4952_v52 = vld [vmem:[#allocation14_spill] sm:$0xff]  ;;  %v1513_v35 = vsel %vm274_vm2, %v4935_v24, %v4283_v54  ;;  %v4956_v24 = vld [vmem:[#allocation93_spill] sm:$0xff] }
 0x3b3   :  { %2335 = vmatpush1.msra.mxu1 %v1027_v45  ;;  %v4368_v20 = vpop.permute.xlu1 %1459  ;;  %2206 = vmatprep.subr.mxu0 %v3534_v46  ;;  %v4921_v46 = vld [vmem:[#allocation19_spill] sm:$0xff] }
 0x3b4   :  { %2336 = vmatprep.subr.mxu1 %v1022_v25  ;;  %v896_v40 = vpop.permute.xlu0 %895  ;;  %2207 = vmatpush1.msra.mxu0 %v4919_v31  ;;  %v4938_v45 = vld [vmem:[#allocation51_spill] sm:$0xff]  ;;  %v4939_v25 = vld [vmem:[#allocation16_spill] sm:$0xff] }
 0x3b5   :  { %v919_v23 = vsel %vm109_vm7, %v4238_v3, %v896_v40  ;;  %2337 = vmatpush1.msra.mxu1 %v3991_v53  ;;  %2208 = vmatprep.subr.mxu0 %v3379_v50  ;;  %v920_v22 = vsel %vm109_vm7, %v896_v40, %v4920_v48  ;;  %v913_v53 = vsel %vm109_vm7, %v4166_v26, %v4216_v59  ;;  %v4922_v3 = vld [vmem:[#allocation13_spill] sm:$0xff]  ;;  %v4940_v40 = vld [vmem:[#allocation75_spill] sm:$0xff] }
 0x3b6   :  { %2338 = vmatprep.subr.mxu1 %v920_v22  ;;  %2209 = vmatpush1.msra.mxu0 %v4921_v46  ;;  %v907_v26 = vsel %vm109_vm7, %v4140_v36, %v4176_v47  ;;  %v1632_v59 = vsel %vm307_vm1, %v3983_v13, %v4174_v16  ;;  %v4923_v36 = vld [vmem:[#allocation85_spill] sm:$0xff]  ;;  %v4924_v13 = vld [vmem:[#allocation64_spill] sm:$0xff]  ;;  %v1506_v31 = vsel %vm274_vm2, %v4940_v40, %v4150_v42 }
 0x3b7   :  { %2339 = vmatpush1.msra.mxu1 %v919_v23  ;;  %v4382_v21 = vpop.permute.xlu1 %1337  ;;  %2210 = vmatprep.subr.mxu0 %v3349_v7  ;;  %v1637_v7 = vsel %vm307_vm1, %v3730_v4, %v4108_v14  ;;  %v902_v14 = vsel %vm109_vm7, %v4011_v18, %v4920_v48  ;;  %v1626_v47 = vsel %vm307_vm1, %v4923_v36, %v4128_v57  ;;  %v4926_v18 = vld [vmem:[#allocation41_spill] sm:$0xff]  ;;  %v4929_v57 = vld [vmem:[#allocation55_spill] sm:$0xff]  ;;  %v4941_v48 = vld [vmem:[#allocation46_spill] sm:$0xff] }
 0x3b8   :  { %2340 = vmatprep.subr.mxu1 %v914_v49  ;;  %v4391_v50 = vpop.permute.xlu0 %1253  ;;  %2211 = vmatpush1.msra.mxu0 %v4922_v3  ;;  %v1625_v33 = vsel %vm307_vm1, %v4924_v13, %v4923_v36  ;;  %v1620_v27 = vsel %vm307_vm1, %v4927_v9, %v4926_v18  ;;  %v4942_v22 = vld [vmem:[#allocation5_spill] sm:$0xff]  ;;  %v4943_v49 = vld [vmem:[#allocation66_spill] sm:$0xff]  ;;  %v4944_v3 = vld [vmem:[#allocation76_spill] sm:$0xff] }
 0x3b9   :  { %2341 = vmatpush1.msra.mxu1 %v913_v53  ;;  %2212 = vmatprep.subr.mxu0 %v1638_v55  ;;  %v1505_v53 = vsel %vm274_vm2, %v4943_v49, %v4940_v40  ;;  %v1500_v55 = vsel %vm274_vm2, %v4944_v3, %v4251_v0  ;;  %v4946_v36 = vld [vmem:[#allocation86_spill] sm:$0xff] }
 0x3ba   :  { %2342 = vmatprep.subr.mxu1 %v908_v8  ;;  %2213 = vmatpush2.msra.mxu0 %v1637_v7  ;;  %v4945_v7 = vld [vmem:[#allocation58_spill] sm:$0xff] }
 0x3bb   :  { %2343 = vmatpush1.msra.mxu1 %v907_v26  ;;  %v4409_v38 = vpop.permute.xlu1 %1251  ;;  %2214 = vmatprep.subr.mxu0 %v1632_v59  ;;  %v1499_v8 = vsel %vm274_vm2, %v4945_v7, %v4944_v3  ;;  %v1633_v26 = vsel %vm307_vm1, %v4174_v16, %v4233_v43  ;;  %v4947_v13 = vld [vmem:[#allocation18_spill] sm:$0xff]  ;;  %v1392_v16 = vsel %vm241_vm3, %v4207_v51, %v4297_v17 }
 0x3bc   :  { %2344 = vmatprep.subr.mxu1 %v902_v14  ;;  %v4414_v4 = vpop.permute.xlu0 %1239  ;;  %2215 = vmatpush2.msra.mxu0 %v3996_v62  ;;  %v1398_v14 = vsel %vm241_vm3, %v4264_v61, %v4269_v60  ;;  %v4949_v18 = vld [vmem:[#allocation26_spill] sm:$0xff] }
 0x3bd   :  { %2345 = vmatpush1.msra.mxu1 %v4021_v30  ;;  %2216 = vmatprep.subr.mxu0 %v1626_v47  ;;  %v1619_v30 = vsel %vm307_vm1, %v4929_v57, %v4927_v9  ;;  %v1397_v47 = vsel %vm241_vm3, %v4946_v36, %v4264_v61  ;;  %v4950_v61 = vld [vmem:[#allocation24_spill] sm:$0xff]  ;;  %v1386_v57 = vsel %vm241_vm3, %v4328_v10, %v4308_v34 }
 0x3be   :  { %2346 = vmatprep.subr.mxu1 %v4925_v11  ;;  %2217 = vmatpush2.msra.mxu0 %v1625_v33  ;;  %v1628_v33 = vsel %vm307_vm1, %v4947_v13, %v4942_v22 }
 0x3bf   :  { %2347 = vmatpush1.msra.mxu1 %v4928_v6  ;;  %v4429_v62 = vpop.permute.xlu1 %1363  ;;  %2218 = vmatprep.subr.mxu0 %v1620_v27  ;;  %v1622_v27 = vsel %vm307_vm1, %v4950_v61, %v4942_v22 }
 0x3c0   :  { %2348 = vmatprep.subr.mxu1 %v4930_v15  ;;  %v4435_v44 = vpop.permute.xlu0 %1351  ;;  %2219 = vmatpush2.msra.mxu0 %v1619_v30  ;;  %v4951_v30 = vld [vmem:[#allocation69_spill] sm:$0xff] }
 0x3c1   :  { %2349 = vmatpush1.msra.mxu1 %v4933_v41  ;;  %2220 = vmatprep.subr.mxu0 %v1518_v29  ;;  %v4953_v29 = vld [vmem:[#allocation6_spill] sm:$0xff]  ;;  %v4954_v41 = vld [vmem:[#allocation60_spill] sm:$0xff] }
 0x3c2   :  { %2350 = vmatprep.subr.mxu1 %v4934_v37  ;;  %2221 = vmatpush2.msra.mxu0 %v1517_v56  ;;  %v1380_v56 = vsel %vm241_vm3, %v4358_v63, %v4382_v21  ;;  %v1379_v37 = vsel %vm241_vm3, %v4954_v41, %v4358_v63  ;;  %v4955_v63 = vld [vmem:[#allocation88_spill] sm:$0xff]  ;;  %v4968_v41 = vld [vmem:[#allocation50_spill] sm:$0xff] }
 0x3c3   :  { %2351 = vmatpush1.msra.mxu1 %v4937_v12  ;;  %v4449_v28 = vpop.permute.xlu1 %1241  ;;  %2222 = vmatprep.subr.mxu0 %v1512_v1  ;;  %v1278_v12 = vsel %vm208_vm4, %v4409_v38, %v4391_v50 }
 0x3c4   :  { %2352 = vmatprep.subr.mxu1 %v4938_v45  ;;  %v1616_v58 = vpop.permute.xlu0 %1615  ;;  %2223 = vmatpush2.msra.mxu0 %v4939_v25  ;;  %v1277_v45 = vsel %vm208_vm4, %v4955_v63, %v4409_v38  ;;  %v1271_v25 = vsel %vm208_vm4, %v4956_v24, %v4414_v4  ;;  %v1502_v38 = vsel %vm274_vm2, %v4368_v20, %v4953_v29 }
 0x3c5   :  { %v1639_v23 = vsel %vm307_vm1, %v4347_v19, %v1616_v58  ;;  %2353 = vmatpush1.msra.mxu1 %v4941_v48  ;;  %2224 = vmatprep.subr.mxu0 %v1506_v31  ;;  %v1640_v46 = vsel %vm307_vm1, %v1616_v58, %v4942_v22  ;;  %v1634_v19 = vsel %vm307_vm1, %v4233_v43, %v4942_v22  ;;  %v4948_v43 = vld [vmem:[#allocation91_spill] sm:$0xff] }
 0x3c6   :  { %2354 = vmatprep.subr.mxu1 %v1640_v46  ;;  %2225 = vmatpush2.msra.mxu0 %v1505_v53  ;;  %v1391_v11 = vsel %vm241_vm3, %v4948_v43, %v4207_v51  ;;  %v1385_v51 = vsel %vm241_vm3, %v4951_v30, %v4328_v10  ;;  %v1508_v58 = vsel %vm274_vm2, %v4221_v32, %v4953_v29  ;;  %v4957_v48 = vld [vmem:[#allocation79_spill] sm:$0xff] }
 0x3c7   :  { %2355 = vmatpush2.msra.mxu1 %v1639_v23  ;;  %v1228_v42 = vpop.permute.xlu1 %1227  ;;  %2226 = vmatprep.subr.mxu0 %v1500_v55  ;;  %v1501_v32 = vsel %vm274_vm2, %v4251_v0, %v4368_v20  ;;  %v4958_v22 = vld [vmem:[#allocation7_spill] sm:$0xff]  ;;  %v4959_v20 = vld [vmem:[#allocation61_spill] sm:$0xff]  ;;  %v2468_v55 = vld [vmem:[%s4646_s1 + $0x20] sm:$0xff] }
 0x3c8   :  { %2356 = vmatprep.subr.mxu1 %v1634_v19  ;;  %v4476_v59 = vpop.permute.xlu0 %1229  ;;  %2227 = vmatpush2.msra.mxu0 %v1499_v8  ;;  %v1394_v53 = vsel %vm241_vm3, %v4429_v62, %v4958_v22  ;;  %v4960_v19 = vld [vmem:[#allocation37_spill] sm:$0xff]  ;;  %v1388_v7 = vsel %vm241_vm3, %v4435_v44, %v4958_v22  ;;  %v1387_v8 = vsel %vm241_vm3, %v4308_v34, %v4435_v44  ;;  %v4962_v44 = vld [vmem:[#allocation8_spill] sm:$0xff] }
 0x3c9   :  { %2357 = vmatpush2.msra.mxu1 %v1633_v26  ;;  %2228 = vmatprep.subr.mxu0 %v1398_v14  ;;  %v1266_v23 = vsel %vm208_vm4, %v1228_v42, %v4476_v59 }
 0x3ca   :  { %2358 = vmatprep.subr.mxu1 %v1628_v33  ;;  %2229 = vmatpush2.msra.mxu0 %v1397_v47 }
 0x3cb   :  { %2359 = vmatpush2.msra.mxu1 %v4949_v18  ;;  %v4494_v9 = vpop.permute.xlu1 %1339  ;;  %2230 = vmatprep.subr.mxu0 %v1392_v16  ;;  %v4963_v16 = vld [vmem:[#allocation15_spill] sm:$0xff] }
 0x3cc   :  { %2360 = vmatprep.subr.mxu1 %v1622_v27  ;;  %v1496_v6 = vpop.permute.xlu0 %1495  ;;  %2231 = vmatpush2.msra.mxu0 %v1391_v11  ;;  %v1381_v26 = vsel %vm241_vm3, %v4382_v21, %v4494_v9  ;;  %v4964_v11 = vld [vmem:[#allocation4_spill] sm:$0xff]  ;;  %v4965_v27 = vld [vmem:[#allocation43_spill] sm:$0xff] }
 0x3cd   :  { %v1519_v15 = vsel %vm274_vm2, %v4253_v5, %v1496_v6  ;;  %2361 = vmatpush2.msra.mxu1 %v4952_v52  ;;  %2232 = vmatprep.subr.mxu0 %v1386_v57  ;;  %v1520_v39 = vsel %vm274_vm2, %v1496_v6, %v4953_v29  ;;  %v1514_v5 = vsel %vm274_vm2, %v4283_v54, %v4953_v29 }
 0x3ce   :  { %2362 = vmatprep.subr.mxu1 %v1520_v39  ;;  %2233 = vmatpush2.msra.mxu0 %v1385_v51  ;;  %v1272_v54 = vsel %vm208_vm4, %v4414_v4, %v4449_v28  ;;  %v1265_v4 = vsel %vm208_vm4, %v4957_v48, %v1228_v42  ;;  %v4966_v51 = vld [vmem:[#allocation47_spill] sm:$0xff]  ;;  %v4967_v39 = vld [vmem:[#allocation92_spill] sm:$0xff] }
 0x3cf   :  { %2363 = vmatpush2.msra.mxu1 %v1519_v15  ;;  %v4516_v10 = vpop.permute.xlu1 %1217  ;;  %2234 = vmatprep.subr.mxu0 %v1380_v56 }
 0x3d0   :  { %2364 = vmatprep.subr.mxu1 %v1514_v5  ;;  %v1216_v1 = vpop.permute.xlu0 %1215  ;;  %2235 = vmatpush2.msra.mxu0 %v1379_v37 }
 0x3d1   :  { %2365 = vmatpush2.msra.mxu1 %v1513_v35  ;;  %2236 = vmatprep.subr.mxu0 %v1278_v12  ;;  %v1260_v0 = vsel %vm208_vm4, %v1216_v1, %v4516_v10  ;;  %v1259_v49 = vsel %vm208_vm4, %v4959_v20, %v1216_v1 }
 0x3d2   :  { %2366 = vmatprep.subr.mxu1 %v1508_v58  ;;  %2237 = vmatpush2.msra.mxu0 %v1277_v45 }
 0x3d3   :  { %2367 = vmatpush2.msra.mxu1 %v4229_v2  ;;  %v1244_v40 = vpop.permute.xlu1 %1243  ;;  %2238 = vmatprep.subr.mxu0 %v1272_v54 }
 0x3d4   :  { %2368 = vmatprep.subr.mxu1 %v1502_v38  ;;  %v1376_v31 = vpop.permute.xlu0 %1375  ;;  %2239 = vmatpush2.msra.mxu0 %v1271_v25  ;;  %v1274_v13 = vsel %vm208_vm4, %v1244_v40, %v4962_v44  ;;  %v1273_v33 = vsel %vm208_vm4, %v4449_v28, %v1244_v40 }
 0x3d5   :  { %v1399_v2 = vsel %vm241_vm3, %v4269_v60, %v1376_v31  ;;  %2369 = vmatpush2.msra.mxu1 %v1501_v32  ;;  %2240 = vmatprep.subr.mxu0 %v1266_v23  ;;  %v1400_v46 = vsel %vm241_vm3, %v1376_v31, %v4958_v22  ;;  %v1393_v60 = vsel %vm241_vm3, %v4297_v17, %v4429_v62  ;;  %v4961_v17 = vmov 0.0   ;;  %v2506_v32 = vld [vmem:[%s4652_s8] sm:$0x3f] }
 0x3d6   :  { %2370 = vmatprep.subr.mxu1 %v1400_v46  ;;  %2241 = vmatpush2.msra.mxu0 %v1265_v4  ;;  %v1382_v62 = vsel %vm241_vm3, %v4494_v9, %v4958_v22  ;;  %v4969_v31 = vld [vmem:[#allocation12_spill] sm:$0xff] }
 0x3d7   :  { %2371 = vmatpush2.msra.mxu1 %v1399_v2  ;;  %2242 = vmatprep.subr.mxu0 %v1260_v0  ;;  %v4970_v23 = vsub.s32 1, %v4969_v31  ;;  %v4971_v20 = vsub.s32 0, %v4969_v31 }
 0x3d8   :  { %2372 = vmatprep.subr.mxu1 %v1394_v53  ;;  %v1724_v3 = vpop.permute.xlu0 %1723  ;;  %2243 = vmatpush2.msra.mxu0 %v1259_v49  ;;  %v1232_v42 = vpop.permute.xlu1 %1231 }
 0x3d9   :  { %2373 = vmatpush2.msra.mxu1 %v1393_v60  ;;  %2245 = vmatmul.mubr.f32.vlgmr.msra.gmra.mxu0 %v4960_v19  ;;  %v1267_v9 = vsel %vm208_vm4, %v4476_v59, %v1232_v42  ;;  %v1754_v61 = vsel %vm340_vm0, %v1724_v3, %v4964_v11  ;;  %v1753_v6 = vsel %vm340_vm0, %v4965_v27, %v1724_v3 }
 0x3da   :  { %2374 = vmatprep.subr.mxu1 %v1388_v7  ;;  %2457 = vmatprep.mubr.f32.mxu0 %v4961_v17  ;;  %v2515_v48 = vrot.slane %v2506_v32, %v4970_v23  ;;  %v2511_v49 = vrot.slane %v2506_v32, %v4971_v20  ;;  %v4972_v7 = vsub.s32 2, %v4969_v31 }
 0x3db   :  { %2375 = vmatpush2.msra.mxu1 %v1387_v8  ;;  %2484 = vrot.lane.b32.xlu1 %v2468_v55, %s2675_s13 }
 0x3dc   :  { %2376 = vmatprep.subr.mxu1 %v1382_v62  ;;  %v1220_v47 = vpop.permute.xlu1 %1219  ;;  %v2519_v8 = vrot.slane %v2506_v32, %v4972_v7 }
 0x3dd   :  { %v1256_v14 = vpop.permute.xlu0 %1255  ;;  %2377 = vmatpush2.msra.mxu1 %v1381_v26  ;;  %v1262_v28 = vsel %vm208_vm4, %v1220_v47, %v4962_v44  ;;  %v1261_v57 = vsel %vm208_vm4, %v4516_v10, %v1220_v47 }
 0x3de   :  { %v1279_v34 = vsel %vm208_vm4, %v4391_v50, %v1256_v14  ;;  %v1280_v36 = vsel %vm208_vm4, %v1256_v14, %v4962_v44  ;;  %v1268_v50 = vsel %vm208_vm4, %v1232_v42, %v4962_v44 }
 0x3df   :  { %2378 = vmatprep.subr.mxu1 %v1280_v36  ;;  %v4973_v36 = vsub.s32 3, %v4969_v31 }
 0x3e0   :  { %2379 = vmatpush2.msra.mxu1 %v1279_v34  ;;  %v1700_v30 = vpop.permute.xlu1 %1699 }
 0x3e1   :  { %2380 = vmatprep.subr.mxu1 %v1274_v13  ;;  %v1736_v21 = vpop.permute.xlu0 %1735  ;;  %v1742_v29 = vsel %vm340_vm0, %v1700_v30, %v4964_v11  ;;  %v1741_v56 = vsel %vm340_vm0, %v4967_v39, %v1700_v30  ;;  %v2523_v47 = vrot.slane %v2506_v32, %v4973_v36 }
 0x3e2   :  { %v1759_v43 = vsel %vm340_vm0, %v4963_v16, %v1736_v21  ;;  %2381 = vmatpush2.msra.mxu1 %v1273_v33  ;;  %v1760_v18 = vsel %vm340_vm0, %v1736_v21, %v4964_v11 }
 0x3e3   :  { %2382 = vmatprep.subr.mxu1 %v1268_v50  ;;  %2417 = vmatprep.subr.mxu0 %v1760_v18 }
 0x3e4   :  { %2383 = vmatpush2.msra.mxu1 %v1267_v9  ;;  %2418 = vmatpush1.msra.mxu0 %v1759_v43  ;;  %v2477_v10 = vpop.permute.xlu1 %2476 }
 0x3e5   :  { %2384 = vmatprep.subr.mxu1 %v1262_v28  ;;  %2419 = vmatprep.subr.mxu0 %v1754_v61  ;;  %v1712_v59 = vpop.permute.xlu0 %1711 }
 0x3e6   :  { %v1747_v15 = vsel %vm340_vm0, %v4966_v51, %v1712_v59  ;;  %2385 = vmatpush2.msra.mxu1 %v1261_v57  ;;  %2420 = vmatpush1.msra.mxu0 %v1753_v6  ;;  %v1748_v52 = vsel %vm340_vm0, %v1712_v59, %v4964_v11 }
 0x3e7   :  { %2387 = vmatmul.mubr.f32.vlgmr.msra.gmra.mxu1 %v4960_v19  ;;  %2421 = vmatprep.subr.mxu0 %v1748_v52 }
 0x3e8   :  { %2422 = vmatpush1.msra.mxu0 %v1747_v15  ;;  %v2481_v58 = vpop.permute.xlu1 %2480 }
 0x3e9   :  { %2423 = vmatprep.subr.mxu0 %v1742_v29 }
 0x3ea   :  { %2424 = vmatpush1.msra.mxu0 %v1741_v56 }
 0x3eb   :  { %2656 = vmatmul.mubr.msk.f32.vlgmr.msra.gmra.mxu0 %vm2034_vm9, %v4968_v41 }
 0x3f2   :  { %v2032_v1 = vpop.permute.xlu0 %2031 }
 0x3f6   :  { %v2479_v54 = vpop.permute.xlu0 %2478 }
 0x3f7   :  { %v2489_v25 = vsel %vm340_vm0, %v2479_v54, %v2481_v58  ;;  %v2488_v38 = vsel %vm340_vm0, %v2477_v10, %v2479_v54 }
 0x3fa   :  { %v2483_v46 = vpop.permute.xlu0 %2482 }
 0x3fb   :  { %v2490_v3 = vsel %vm340_vm0, %v2481_v58, %v2483_v46  ;;  %v4975_v58 = vsub.s32 5, %v4969_v31 }
 0x3fd   :  { %v2531_v54 = vrot.slane %v2506_v32, %v4975_v58 }
 0x3fe   :  { %v2487_v15 = vpop.permute.xlu0 %2486 }
 0x3ff   :  { %v2493_v23 = vsel %vm340_vm0, %v2487_v15, %v4964_v11 }
 0x429   :  { %v2104_v37 = vpop.f32.mrf.mxu1 }
 0x42a   :  { %v2105_v45 = vadd.f32 %v2104_v37, %v2032_v1  ;;  %v4974_v37 = vsub.s32 4, %v4969_v31 }
 0x42b   :  { %v2106_v5 = vpop.f32.mrf.mxu1  ;;  %v2175_v35 = vpop.f32.mrf.mxu0 }
 0x42c   :  { %v2107_v12 = vadd.f32 %v2106_v5, %v2032_v1  ;;  %v2176_v40 = vadd.f32 %v2175_v35, %v2105_v45  ;;  %v2527_v10 = vrot.slane %v2506_v32, %v4974_v37 }
 0x42d   :  { %v2177_v63 = vpop.f32.mrf.mxu0 }
 0x42e   :  { %v2178_v24 = vadd.f32 %v2177_v63, %v2107_v12  ;;  %v2500_v0 = vsub.f32 %v2176_v40, %v2488_v38 }
 0x430   :  { %v2501_v4 = vsub.f32 %v2178_v24, %v2489_v25  ;;  %v2538_v14 = vmul.f32 %v2511_v49, %v2500_v0  ;;  %v2683_v49 = vmov 1966171168  }
 0x432   :  { %v2539_v42 = vmul.f32 %v2515_v48, %v2501_v4  ;;  %v2544_v16 = vmul.f32 %v2538_v14, %v2538_v14 }
 0x434   :  { %v2545_v13 = vmul.f32 %v2539_v42, %v2539_v42  ;;  %v2550_v61 = vrot.slane %v2544_v16, 4 }
 0x436   :  { %v2556_v18 = vrot.slane %v2545_v13, 4  ;;  %v2551_v52 = vadd.f32 %v2550_v61, %v2544_v16 }
 0x438   :  { %v2557_v57 = vadd.f32 %v2556_v18, %v2545_v13  ;;  %v2552_v24 = vrot.slane %v2551_v52, 2 }
 0x43a   :  { %v2558_v5 = vrot.slane %v2557_v57, 2 }
 0x43c   :  { %v2559_v48 = vadd.f32 %v2558_v5, %v2557_v57 }
 0x44d   :  { %v2485_v60 = vpop.permute.xlu1 %2484 }
 0x44e   :  { %v2491_v26 = vsel %vm340_vm0, %v2483_v46, %v2485_v60  ;;  %v2492_v56 = vsel %vm340_vm0, %v2485_v60, %v2487_v15  ;;  %v2553_v46 = vadd.f32 %v2552_v24, %v2551_v52  ;;  %v2560_v60 = vrot.slane %v2559_v48, 1 }
 0x450   :  { %v2554_v42 = vrot.slane %v2553_v46, 1  ;;  %v2561_v11 = vadd.f32 %v2560_v60, %v2559_v48 }
 0x452   :  { %v2317_v2 = vpop.f32.mrf.mxu1 }
 0x454   :  { %v2319_v62 = vpop.f32.mrf.mxu1 }
 0x499   :  { %v2246_v22 = vpop.f32.mrf.mxu0 }
 0x49a   :  { %v2247_v53 = vadd.f32 %v2246_v22, %v2032_v1 }
 0x49b   :  { %v2248_v55 = vpop.f32.mrf.mxu0 }
 0x49c   :  { %v2318_v19 = vadd.f32 %v2317_v2, %v2247_v53  ;;  %v2249_v17 = vadd.f32 %v2248_v55, %v2032_v1  ;;  %v2596_v53 = vunpack.c.l.s4 %v2683_v49 }
 0x49e   :  { %v2502_v34 = vsub.f32 %v2318_v19, %v2490_v3  ;;  %v2320_v44 = vadd.f32 %v2319_v62, %v2249_v17  ;;  %v2597_v17 = vunpack.c.0.s8 %v2596_v53 }
 0x4a0   :  { %v2540_v33 = vmul.f32 %v2519_v8, %v2502_v34  ;;  %v2503_v21 = vsub.f32 %v2320_v44, %v2491_v26  ;;  %v2555_v34 = vadd.f32 %v2554_v42, %v2553_v46  ;;  %v2600_v13 = vsub.s32 %v2597_v17, %v4969_v31 }
 0x4a2   :  { %v2546_v43 = vmul.f32 %v2540_v33, %v2540_v33  ;;  %v2541_v50 = vmul.f32 %v2523_v47, %v2503_v21  ;;  %v2592_v33 = vcombine.low %v2555_v34, %v2561_v11 }
 0x4a4   :  { %v2562_v9 = vrot.slane %v2546_v43, 4  ;;  %v2547_v28 = vmul.f32 %v2541_v50, %v2541_v50  ;;  %v2601_v18 = vrot.slane %v2592_v33, %v2600_v13 }
 0x4a6   :  { %v2568_v27 = vrot.slane %v2547_v28, 4  ;;  %v2563_v30 = vadd.f32 %v2562_v9, %v2546_v43 }
 0x4a7   :  { %v2388_v6 = vpop.f32.mrf.mxu1 }
 0x4a8   :  { %v2569_v59 = vadd.f32 %v2568_v27, %v2547_v28  ;;  %v2389_v39 = vadd.f32 %v2388_v6, %v2032_v1  ;;  %v2564_v35 = vrot.slane %v2563_v30, 2 }
 0x4a9   :  { %v2390_v51 = vpop.f32.mrf.mxu1 }
 0x4aa   :  { %v2570_v29 = vrot.slane %v2569_v59, 2  ;;  %v2391_v12 = vadd.f32 %v2390_v51, %v2032_v1  ;;  %v2565_v4 = vadd.f32 %v2564_v35, %v2563_v30 }
 0x4ab   :  { %v2459_v41 = vpop.f32.mrf.mxu0 }
 0x4ac   :  { %v2460_v63 = vadd.f32 %v2459_v41, %v2389_v39  ;;  %v2571_v25 = vadd.f32 %v2570_v29, %v2569_v59  ;;  %v2566_v3 = vrot.slane %v2565_v4, 1  ;;  %v4976_v59 = vlaneseq }
 0x4ad   :  { %v2461_v45 = vpop.f32.mrf.mxu0 }
 0x4ae   :  { %v2504_v40 = vsub.f32 %v2460_v63, %v2492_v56  ;;  %v2462_v38 = vadd.f32 %v2461_v45, %v2391_v12  ;;  %v2572_v0 = vrot.slane %v2571_v25, 1  ;;  %v2567_v62 = vadd.f32 %v2566_v3, %v2565_v4 }
 0x4af   :  { %vm2635_vm10 = vcmp.lt.s32.totalorder %v4976_v59, 768 }
 0x4b0   :  { %v2542_v2 = vmul.f32 %v2527_v10, %v2504_v40  ;;  %v2505_v22 = vsub.f32 %v2462_v38, %v2493_v23  ;;  %v2573_v19 = vadd.f32 %v2572_v0, %v2571_v25 }
 0x4b2   :  { %v2548_v20 = vmul.f32 %v2542_v2, %v2542_v2  ;;  %v2543_v1 = vmul.f32 %v2531_v54, %v2505_v22  ;;  %v2593_v44 = vcombine.low %v2567_v62, %v2573_v19 }
 0x4b4   :  { %v2574_v32 = vrot.slane %v2548_v20, 4  ;;  %v2549_v55 = vmul.f32 %v2543_v1, %v2543_v1  ;;  %v2608_v43 = vrot.slane %v2593_v44, %v2600_v13 }
 0x4b6   :  { %v2575_v7 = vadd.f32 %v2574_v32, %v2548_v20  ;;  %v2580_v8 = vrot.slane %v2549_v55, 4  ;;  %v2616_v61 = vcombine.low %v2601_v18, %v2608_v43 }
 0x4b8   :  { %v2576_v26 = vrot.slane %v2575_v7, 2  ;;  %v2581_v14 = vadd.f32 %v2580_v8, %v2549_v55  ;;  %v2623_v57 = vrot.slane %v2616_v61, %v2600_v13 }
 0x4ba   :  { %v2577_v36 = vadd.f32 %v2576_v26, %v2575_v7  ;;  %v2582_v47 = vrot.slane %v2581_v14, 2 }
 0x4bc   :  { %v2578_v21 = vrot.slane %v2577_v36, 1  ;;  %v2583_v16 = vadd.f32 %v2582_v47, %v2581_v14 }
 0x4be   :  { %v2584_v50 = vrot.slane %v2583_v16, 1  ;;  %v2579_v9 = vadd.f32 %v2578_v21, %v2577_v36 }
 0x4c0   :  { %v2585_v28 = vadd.f32 %v2584_v50, %v2583_v16 }
 0x4c2   :  { %v2594_v27 = vcombine.low %v2579_v9, %v2585_v28 }
 0x4c4   :  { %v2615_v6 = vrot.slane %v2594_v27, %v2600_v13 }
 0x4c6   :  { %v2630_v30 = vrot.slane %v2615_v6, %v2600_v13 }
 0x4c8   :  { %v2631_v51 = vcombine.low %v2623_v57, %v2630_v30 }
 0x4ca   :  { %2637 = vst.msk [vmem:[%s4653_s9] sm:$0x3f] %vm2635_vm10, %v2631_v51 }

</bundles_post_ra>
